<compile_context>
chip_gen: v7x
topology: tpu7x:2x2x1
jax: 0.10.0
libtpu: 0.0.40
codegen_flags: <defaults>
</compile_context>

<pallas_src>
import functools

import jax
import jax.numpy as jnp
from jax import lax
from jax.experimental import pallas as pl
from jax.experimental.pallas import tpu as pltpu

EPS = 1e-5
_VMEM_LIMIT = 48 * 1024 * 1024   # explicit scoped-VMEM cap (v7x: 64 MiB physical)

_PAR1 = pltpu.CompilerParams(dimension_semantics=("parallel",),
                             vmem_limit_bytes=_VMEM_LIMIT)
_PAR2 = pltpu.CompilerParams(dimension_semantics=("parallel", "arbitrary"),
                             vmem_limit_bytes=_VMEM_LIMIT)


# --------------------------------------------------------------------------
# Pallas kernels
# --------------------------------------------------------------------------
def _conv3x3_kernel(x_ref, s_ref, b_ref, w_ref, *rest,
                    H, W, Cin, ct, stride, relu_in, in_affine,
                    sc_stats, emit_xsub, n_ct):
    """3x3 same-pad conv (stride 1 or 2) on one image, one Cout tile.

    - Optional fused producer BN affine (+ReLU) on the input while building the
      padded VMEM tile (built once per image; only the 1-px border is zeroed).
    - Conv = 9 accumulating K=Cin tap matmuls read directly off the padded tile
      (strided reads for stride>1) -> no im2col scratch / relayouts.
    - Emits per-image channel sum / sum-of-squares for the consumer BatchNorm,
      and (optionally) the sub-sampled input + its shortcut-BN moments.
    """
    pad_ref = rest[-1]
    outs = rest[:-1]
    y_ref, sum_ref, sq_ref = outs[0], outs[1], outs[2]
    k = 3
    if sc_stats:
        xsum_ref, xxm_ref = outs[k], outs[k + 1]
        k += 2
    if emit_xsub:
        xsub_ref = outs[k]

    Ho, Wo = H // stride, W // stride
    cdt = pad_ref.dtype

    def build_pad():
        v = x_ref[0]                                         # (H, W, Cin)
        if in_affine:
            v = v.astype(jnp.float32) * s_ref[0] + b_ref[0]
        if relu_in:
            v = jnp.maximum(v.astype(jnp.float32), 0.0)
        v = v.astype(cdt)
        # zero only the 1-px halo; interior is fully overwritten below
        pad_ref[0:1, :, :] = jnp.zeros((1, W + 2, Cin), cdt)
        pad_ref[H + 1:H + 2, :, :] = jnp.zeros((1, W + 2, Cin), cdt)
        pad_ref[1:H + 1, 0:1, :] = jnp.zeros((H, 1, Cin), cdt)
        pad_ref[1:H + 1, W + 1:W + 2, :] = jnp.zeros((H, 1, Cin), cdt)
        pad_ref[1:H + 1, 1:W + 1, :] = v

    def shortcut_stats():
        # sub-sampled input + its first/second moments, straight from VMEM
        if stride == 1:
            xs = pad_ref[1:H + 1, 1:W + 1, :]
        else:
            xs = pad_ref[pl.ds(1, Ho, stride), pl.ds(1, Wo, stride), :]
        xs2 = xs.reshape(Ho * Wo, Cin).astype(jnp.float32)
        xsum_ref[...] = jnp.sum(xs2, axis=0).reshape(1, 1, 1, Cin)
        xxm_ref[...] = jnp.dot(xs2.T, xs2,
                               preferred_element_type=jnp.float32
                               ).reshape(1, Cin, Cin)
        if emit_xsub:
            xsub_ref[...] = xs.reshape(1, Ho, Wo, Cin).astype(xsub_ref.dtype)

    if n_ct == 1:
        build_pad()
        if sc_stats:
            shortcut_stats()
    else:
        j = pl.program_id(1)
        pl.when(j == 0)(build_pad)
        if sc_stats:
            pl.when(j == 0)(shortcut_stats)

    # 3x3 conv as 9 accumulating K=Cin tap matmuls (f32 accumulation on MXU)
    acc = jnp.zeros((Ho * Wo, ct), jnp.float32)
    for t in range(9):
        ky, kx = t // 3, t % 3
        if stride == 1:
            tap = pad_ref[ky:ky + H, kx:kx + W, :]
        else:
            tap = pad_ref[pl.ds(ky, Ho, stride), pl.ds(kx, Wo, stride), :]
        acc = acc + jnp.dot(tap.reshape(Ho * Wo, Cin),
                            w_ref[t * Cin:(t + 1) * Cin, :],
                            preferred_element_type=jnp.float32)

    y_ref[...] = acc.reshape(1, Ho, Wo, ct).astype(y_ref.dtype)
    sum_ref[...] = jnp.sum(acc, axis=0).reshape(1, 1, 1, ct)
    sq_ref[...] = jnp.sum(acc * acc, axis=0).reshape(1, 1, 1, ct)


def _bn_add_relu_identity_kernel(y_ref, s_ref, b_ref, r_ref, o_ref):
    """out = relu(bn2(y) + residual), identity shortcut."""
    main = y_ref[...].astype(jnp.float32) * s_ref[...] + b_ref[...]
    o_ref[...] = jnp.maximum(main + r_ref[...].astype(jnp.float32),
                             0.0).astype(o_ref.dtype)


def _bn_add_relu_proj_kernel(y_ref, s_ref, b_ref, x_ref, w_ref, ssc_ref, bsc_ref,
                             o_ref, *, H, W, Cin, Cout):
    """out = relu(bn2(y) + bn_sc(x_sub @ w_sc)) — 1x1 projection shortcut fused."""
    main = y_ref[...].astype(jnp.float32) * s_ref[...] + b_ref[...]   # (1,H,W,Cout)
    xr = x_ref[0].reshape(H * W, Cin)
    sc = jnp.dot(xr, w_ref[...], preferred_element_type=jnp.float32)  # (H*W, Cout)
    sc = sc.reshape(1, H, W, Cout) * ssc_ref[...] + bsc_ref[...]
    o_ref[...] = jnp.maximum(main + sc, 0.0).astype(o_ref.dtype)


# --------------------------------------------------------------------------
# Pallas wrappers
# --------------------------------------------------------------------------
def conv3x3_bn_stats(x, w_hwio, in_scale, in_bias, *, relu_in, in_affine, stride,
                     sc_stats, emit_xsub, compute_dtype, cout_block=None):
    """3x3 conv (stride 1 or 2) with fused input affine(+ReLU) and BN-stat outputs."""
    assert not emit_xsub or sc_stats
    N, H, W, Cin = x.shape
    Cout = w_hwio.shape[-1]
    Ho, Wo = H // stride, W // stride
    ct = Cout if cout_block is None else cout_block
    assert Cout % ct == 0 and (ct == Cout or ct % 128 == 0)
    J = Cout // ct
    wmat = w_hwio.reshape(9 * Cin, Cout).astype(compute_dtype)

    out_shapes = [jax.ShapeDtypeStruct((N, Ho, Wo, Cout), compute_dtype),
                  jax.ShapeDtypeStruct((N, 1, 1, Cout), jnp.float32),
                  jax.ShapeDtypeStruct((N, 1, 1, Cout), jnp.float32)]
    out_specs = [pl.BlockSpec((1, Ho, Wo, ct), lambda n, j: (n, 0, 0, j)),
                 pl.BlockSpec((1, 1, 1, ct), lambda n, j: (n, 0, 0, j)),
                 pl.BlockSpec((1, 1, 1, ct), lambda n, j: (n, 0, 0, j))]
    if sc_stats:
        out_shapes += [jax.ShapeDtypeStruct((N, 1, 1, Cin), jnp.float32),
                       jax.ShapeDtypeStruct((N, Cin, Cin), jnp.float32)]
        out_specs += [pl.BlockSpec((1, 1, 1, Cin), lambda n, j: (n, 0, 0, 0)),
                      pl.BlockSpec((1, Cin, Cin), lambda n, j: (n, 0, 0))]
    if emit_xsub:
        out_shapes += [jax.ShapeDtypeStruct((N, Ho, Wo, Cin), compute_dtype)]
        out_specs += [pl.BlockSpec((1, Ho, Wo, Cin), lambda n, j: (n, 0, 0, 0))]

    kernel = functools.partial(
        _conv3x3_kernel, H=H, W=W, Cin=Cin, ct=ct, stride=stride,
        relu_in=relu_in, in_affine=in_affine, sc_stats=sc_stats,
        emit_xsub=emit_xsub, n_ct=J)

    return pl.pallas_call(
        kernel,
        out_shape=tuple(out_shapes),
        grid=(N, J),
        in_specs=[
            pl.BlockSpec((1, H, W, Cin), lambda n, j: (n, 0, 0, 0)),
            pl.BlockSpec((1, 1, 1, Cin), lambda n, j: (0, 0, 0, 0)),
            pl.BlockSpec((1, 1, 1, Cin), lambda n, j: (0, 0, 0, 0)),
            pl.BlockSpec((9 * Cin, ct), lambda n, j: (0, j)),
        ],
        out_specs=tuple(out_specs),
        scratch_shapes=[pltpu.VMEM((H + 2, W + 2, Cin), compute_dtype)],
        compiler_params=_PAR2,
    )(x, in_scale, in_bias, wmat)


def bn_add_relu_identity(y, scale, bias, res):
    N, H, W, C = y.shape
    return pl.pallas_call(
        _bn_add_relu_identity_kernel,
        out_shape=jax.ShapeDtypeStruct((N, H, W, C), res.dtype),
        grid=(N,),
        in_specs=[
            pl.BlockSpec((1, H, W, C), lambda n: (n, 0, 0, 0)),
            pl.BlockSpec((1, 1, 1, C), lambda n: (0, 0, 0, 0)),
            pl.BlockSpec((1, 1, 1, C), lambda n: (0, 0, 0, 0)),
            pl.BlockSpec((1, H, W, C), lambda n: (n, 0, 0, 0)),
        ],
        out_specs=pl.BlockSpec((1, H, W, C), lambda n: (n, 0, 0, 0)),
        compiler_params=_PAR1,
    )(y, scale, bias, res)


def bn_add_proj_relu(y, scale, bias, x_res, w_sc, sc_scale, sc_bias, *, compute_dtype):
    N, H, W, Cout = y.shape
    Cin = x_res.shape[-1]
    kernel = functools.partial(_bn_add_relu_proj_kernel, H=H, W=W, Cin=Cin, Cout=Cout)
    return pl.pallas_call(
        kernel,
        out_shape=jax.ShapeDtypeStruct((N, H, W, Cout), compute_dtype),
        grid=(N,),
        in_specs=[
            pl.BlockSpec((1, H, W, Cout), lambda n: (n, 0, 0, 0)),
            pl.BlockSpec((1, 1, 1, Cout), lambda n: (0, 0, 0, 0)),
            pl.BlockSpec((1, 1, 1, Cout), lambda n: (0, 0, 0, 0)),
            pl.BlockSpec((1, H, W, Cin), lambda n: (n, 0, 0, 0)),
            pl.BlockSpec((Cin, Cout), lambda n: (0, 0)),
            pl.BlockSpec((1, 1, 1, Cout), lambda n: (0, 0, 0, 0)),
            pl.BlockSpec((1, 1, 1, Cout), lambda n: (0, 0, 0, 0)),
        ],
        out_specs=pl.BlockSpec((1, H, W, Cout), lambda n: (n, 0, 0, 0)),
        compiler_params=_PAR1,
    )(y, scale, bias, x_res.astype(compute_dtype), w_sc.astype(compute_dtype),
      sc_scale, sc_bias)


# --------------------------------------------------------------------------
# BatchNorm (training-mode batch statistics) helpers — tiny O(C)/O(C^2) JAX glue
# --------------------------------------------------------------------------
def _bn_affine_from_stats(ssum, ssq, gamma, beta, count):
    total = jnp.sum(ssum, axis=(0, 1, 2))
    total_sq = jnp.sum(ssq, axis=(0, 1, 2))
    mean = total / count
    var = jnp.maximum(total_sq / count - mean * mean, 0.0)
    scale = gamma / jnp.sqrt(var + EPS)
    bias = beta - mean * scale
    C = gamma.shape[0]
    return scale.reshape(1, 1, 1, C), bias.reshape(1, 1, 1, C)


def _shortcut_affine_from_moments(xsum, xxm, w_sc, gamma, beta, count):
    """BN affine for bn_sc(x_sub @ w_sc) from the kernel-emitted input moments."""
    xm = jnp.sum(xsum, axis=(0, 1, 2)) / count        # (Cin,)
    xx = jnp.sum(xxm, axis=0) / count                 # (Cin, Cin) second moment
    mean = xm @ w_sc                                  # (Cout,)
    ey2 = jnp.einsum("ic,ij,jc->c", w_sc, xx, w_sc)
    var = jnp.maximum(ey2 - mean * mean, 0.0)
    scale = gamma / jnp.sqrt(var + EPS)
    bias = beta - mean * scale
    Cout = gamma.shape[0]
    return scale.reshape(1, 1, 1, Cout), bias.reshape(1, 1, 1, Cout)


# --------------------------------------------------------------------------
# BasicBlock forward (Pallas-backed, NHWC)
# --------------------------------------------------------------------------
def basic_block_forward(x_nhwc, params, *, stride=1, compute_dtype=jnp.float32,
                        cout_block=None):
    N, H, W, Cin = x_nhwc.shape
    assert H % stride == 0 and W % stride == 0
    Ho, Wo = H // stride, W // stride
    has_proj = "wsc" in params
    count = N * Ho * Wo

    x = x_nhwc.astype(compute_dtype)
    ones_in = jnp.ones((1, 1, 1, Cin), jnp.float32)
    zeros_in = jnp.zeros((1, 1, 1, Cin), jnp.float32)

    # conv1 (stride folded in) + BN-stat side outputs (+ shortcut moments/x_sub)
    emit_xsub = has_proj and stride > 1
    res1 = conv3x3_bn_stats(
        x, params["w1"], ones_in, zeros_in,
        relu_in=False, in_affine=False, stride=stride,
        sc_stats=has_proj, emit_xsub=emit_xsub,
        compute_dtype=compute_dtype, cout_block=cout_block)
    if emit_xsub:
        y1, s1sum, s1sq, xsum, xxm, x_sub = res1
    elif has_proj:
        y1, s1sum, s1sq, xsum, xxm = res1
        x_sub = x
    else:
        y1, s1sum, s1sq = res1
        x_sub = x
    s1, b1 = _bn_affine_from_stats(s1sum, s1sq, params["g1"], params["b1"], count)

    # conv2, with bn1 + ReLU fused into its input load, plus BN-stat side outputs
    y2, s2sum, s2sq = conv3x3_bn_stats(
        y1, params["w2"], s1, b1,
        relu_in=True, in_affine=True, stride=1,
        sc_stats=False, emit_xsub=False,
        compute_dtype=compute_dtype, cout_block=cout_block)
    s2, b2 = _bn_affine_from_stats(s2sum, s2sq, params["g2"], params["b2"], count)

    # bn2 + shortcut + add + ReLU fused in one kernel
    if has_proj:
        ssc, bsc = _shortcut_affine_from_moments(xsum, xxm, params["wsc"],
                                                 params["gsc"], params["bsc"], count)
        out = bn_add_proj_relu(y2, s2, b2, x_sub, params["wsc"], ssc, bsc,
                               compute_dtype=compute_dtype)
    else:
        out = bn_add_relu_identity(y2, s2, b2, x)
    return out


# --------------------------------------------------------------------------
# Pure-JAX reference (NHWC, for correctness check)
# --------------------------------------------------------------------------
def reference_forward(x_nhwc, params, *, stride):
    x = x_nhwc.astype(jnp.float32)

    def conv(xx, w, s, pad):
        return lax.conv_general_dilated(
            xx, w, (s, s), pad, dimension_numbers=("NHWC", "HWIO", "NHWC"))

    def bn(y, g, b):
        m = jnp.mean(y, axis=(0, 1, 2))
        v = jnp.var(y, axis=(0, 1, 2))
        return (y - m) / jnp.sqrt(v + EPS) * g + b

    out = jax.nn.relu(bn(conv(x, params["w1"], stride, [(1, 1), (1, 1)]),
                         params["g1"], params["b1"]))
    out = bn(conv(out, params["w2"], 1, [(1, 1), (1, 1)]),
             params["g2"], params["b2"])
    if "wsc" in params:
        Cin, Cout = params["wsc"].shape
        w11 = params["wsc"].reshape(1, 1, Cin, Cout)
        sc = bn(conv(x, w11, stride, [(0, 0), (0, 0)]),
                params["gsc"], params["bsc"])
    else:
        sc = x
    return jax.nn.relu(out + sc)


# --------------------------------------------------------------------------
def make_params(key, in_planes, planes, stride):
    ks = jax.random.split(key, 9)
    params = {
        "w1": 0.1 * jax.random.normal(ks[0], (3, 3, in_planes, planes), jnp.float32),
        "g1": 1.0 + 0.1 * jax.random.normal(ks[1], (planes,), jnp.float32),
        "b1": 0.1 * jax.random.normal(ks[2], (planes,), jnp.float32),
        "w2": 0.1 * jax.random.normal(ks[3], (3, 3, planes, planes), jnp.float32),
        "g2": 1.0 + 0.1 * jax.random.normal(ks[4], (planes,), jnp.float32),
        "b2": 0.1 * jax.random.normal(ks[5], (planes,), jnp.float32),
    }
    if stride != 1 or in_planes != planes:  # expansion == 1
        params["wsc"] = 0.1 * jax.random.normal(ks[6], (in_planes, planes), jnp.float32)
        params["gsc"] = 1.0 + 0.1 * jax.random.normal(ks[7], (planes,), jnp.float32)
        params["bsc"] = 0.1 * jax.random.normal(ks[8], (planes,), jnp.float32)
    return params


if __name__ == "__main__":
    key = jax.random.PRNGKey(0)

    # (in_planes, planes, HW, stride): projection, identity, strided + projection
    configs = [(4, 8, 16, 1), (8, 8, 16, 1), (8, 16, 16, 2)]

    for idx, (cin, planes, hw, stride) in enumerate(configs):
        k_x, k_p, key = jax.random.split(key, 3)
        x = jax.random.normal(k_x, (2, hw, hw, cin), jnp.float32)   # NHWC
        params = make_params(k_p, cin, planes, stride)

        out = jax.block_until_ready(
            basic_block_forward(x, params, stride=stride, compute_dtype=jnp.float32))
        ref = jax.block_until_ready(reference_forward(x, params, stride=stride))
        assert out.shape == ref.shape == (2, hw // stride, hw // stride, planes)
        err = float(jnp.max(jnp.abs(out - ref)))
        assert err < 2e-3, f"config {idx}: f32 max abs err = {err}"

    # bf16 MXU / bf16 activation-traffic path (f32 accumulation): loose check
    k_x, k_p, key = jax.random.split(key, 3)
    x = jax.random.normal(k_x, (2, 16, 16, 4), jnp.float32)
    params = make_params(k_p, 4, 8, 1)
    out_bf = jax.block_until_ready(
        basic_block_forward(x, params, stride=1, compute_dtype=jnp.bfloat16))
    ref = reference_forward(x, params, stride=1)
    rel = float(jnp.linalg.norm(out_bf.astype(jnp.float32) - ref) /
                (jnp.linalg.norm(ref) + 1e-12))
    assert rel < 5e-2, f"bf16 relative error = {rel}"

    print("KERNEL_OK")
</pallas_src>

<mosaic_0001>
module attributes {stable_mosaic.version = 11 : i64} {
  func.func @_conv3x3_kernel(%arg0: i32, %arg1: i32, %arg2: memref<1x16x16x4xf32, #tpu.memory_space<vmem>>, %arg3: memref<1x1x1x4xf32, #tpu.memory_space<vmem>>, %arg4: memref<1x1x1x4xf32, #tpu.memory_space<vmem>>, %arg5: memref<36x8xf32, #tpu.memory_space<vmem>>, %arg6: memref<1x16x16x8xf32, #tpu.memory_space<vmem>>, %arg7: memref<1x1x1x8xf32, #tpu.memory_space<vmem>>, %arg8: memref<1x1x1x8xf32, #tpu.memory_space<vmem>>, %arg9: memref<1x1x1x4xf32, #tpu.memory_space<vmem>>, %arg10: memref<1x4x4xf32, #tpu.memory_space<vmem>>, %arg11: memref<18x18x4xf32, #tpu.memory_space<vmem>>) attributes {dimension_semantics = [#tpu.dimension_semantics<parallel>, #tpu.dimension_semantics<arbitrary>], iteration_bounds = array<i64: 2, 1>, scalar_prefetch = 0 : i64, scratch_operands = 1 : i64, tpu.core_type = #tpu.core_type<tc>, window_params = [{transform_indices = @transform_0, window_bounds = array<i64: 1, 16, 16, 4>}, {pipeline_mode = #tpu.pipeline_mode<synchronous>, transform_indices = @transform_1, window_bounds = array<i64: 1, 1, 1, 4>}, {pipeline_mode = #tpu.pipeline_mode<synchronous>, transform_indices = @transform_2, window_bounds = array<i64: 1, 1, 1, 4>}, {transform_indices = @transform_3, window_bounds = array<i64: 36, 8>}, {transform_indices = @transform_4, window_bounds = array<i64: 1, 16, 16, 8>}, {transform_indices = @transform_5, window_bounds = array<i64: 1, 1, 1, 8>}, {transform_indices = @transform_6, window_bounds = array<i64: 1, 1, 1, 8>}, {transform_indices = @transform_7, window_bounds = array<i64: 1, 1, 1, 4>}, {transform_indices = @transform_8, window_bounds = array<i64: 1, 4, 4>}]} {
    %c0 = arith.constant 0 : index
    %c0_0 = arith.constant 0 : index
    %c0_1 = arith.constant 0 : index
    %c0_2 = arith.constant 0 : index
    %0 = vector.load %arg2[%c0, %c0_0, %c0_1, %c0_2] : memref<1x16x16x4xf32, #tpu.memory_space<vmem>>, vector<1x16x16x4xf32>
    %1 = vector.shape_cast %0 : vector<1x16x16x4xf32> to vector<16x16x4xf32>
    %cst = arith.constant 0.000000e+00 : f32
    %2 = vector.broadcast %cst : f32 to vector<1x18x4xf32>
    %c0_3 = arith.constant 0 : index
    %c0_4 = arith.constant 0 : index
    %c0_5 = arith.constant 0 : index
    %3 = vector.load %arg11[%c0_3, %c0_4, %c0_5] : memref<18x18x4xf32, #tpu.memory_space<vmem>>, vector<1x18x4xf32>
    tpu.vector_store %arg11[%c0_3, %c0_4, %c0_5], %2 {strides = array<i32>} : memref<18x18x4xf32, #tpu.memory_space<vmem>>, vector<1x18x4xf32>,
    %cst_6 = arith.constant 0.000000e+00 : f32
    %4 = vector.broadcast %cst_6 : f32 to vector<1x18x4xf32>
    %c17 = arith.constant 17 : index
    %c0_7 = arith.constant 0 : index
    %c0_8 = arith.constant 0 : index
    %5 = vector.load %arg11[%c17, %c0_7, %c0_8] : memref<18x18x4xf32, #tpu.memory_space<vmem>>, vector<1x18x4xf32>
    tpu.vector_store %arg11[%c17, %c0_7, %c0_8], %4 {strides = array<i32>} : memref<18x18x4xf32, #tpu.memory_space<vmem>>, vector<1x18x4xf32>,
    %cst_9 = arith.constant 0.000000e+00 : f32
    %6 = vector.broadcast %cst_9 : f32 to vector<16x1x4xf32>
    %c1 = arith.constant 1 : index
    %c0_10 = arith.constant 0 : index
    %c0_11 = arith.constant 0 : index
    %7 = vector.load %arg11[%c1, %c0_10, %c0_11] : memref<18x18x4xf32, #tpu.memory_space<vmem>>, vector<16x1x4xf32>
    tpu.vector_store %arg11[%c1, %c0_10, %c0_11], %6 {strides = array<i32>} : memref<18x18x4xf32, #tpu.memory_space<vmem>>, vector<16x1x4xf32>,
    %cst_12 = arith.constant 0.000000e+00 : f32
    %8 = vector.broadcast %cst_12 : f32 to vector<16x1x4xf32>
    %c1_13 = arith.constant 1 : index
    %c17_14 = arith.constant 17 : index
    %c0_15 = arith.constant 0 : index
    %9 = vector.load %arg11[%c1_13, %c17_14, %c0_15] : memref<18x18x4xf32, #tpu.memory_space<vmem>>, vector<16x1x4xf32>
    tpu.vector_store %arg11[%c1_13, %c17_14, %c0_15], %8 {strides = array<i32>} : memref<18x18x4xf32, #tpu.memory_space<vmem>>, vector<16x1x4xf32>,
    %c1_16 = arith.constant 1 : index
    %c1_17 = arith.constant 1 : index
    %c0_18 = arith.constant 0 : index
    %10 = vector.load %arg11[%c1_16, %c1_17, %c0_18] : memref<18x18x4xf32, #tpu.memory_space<vmem>>, vector<16x16x4xf32>
    tpu.vector_store %arg11[%c1_16, %c1_17, %c0_18], %1 {strides = array<i32>} : memref<18x18x4xf32, #tpu.memory_space<vmem>>, vector<16x16x4xf32>,
    %c1_19 = arith.constant 1 : index
    %c1_20 = arith.constant 1 : index
    %c0_21 = arith.constant 0 : index
    %11 = vector.load %arg11[%c1_19, %c1_20, %c0_21] : memref<18x18x4xf32, #tpu.memory_space<vmem>>, vector<16x16x4xf32>
    %12 = vector.shape_cast %11 : vector<16x16x4xf32> to vector<256x4xf32>
    %cst_22 = arith.constant dense<0.000000e+00> : vector<4xf32>
    %13 = vector.multi_reduction <add>, %12, %cst_22 [0] : vector<256x4xf32> to vector<4xf32>
    %14 = vector.shape_cast %13 : vector<4xf32> to vector<1x1x1x4xf32>
    %c0_23 = arith.constant 0 : index
    %c0_24 = arith.constant 0 : index
    %c0_25 = arith.constant 0 : index
    %c0_26 = arith.constant 0 : index
    %15 = vector.load %arg9[%c0_23, %c0_24, %c0_25, %c0_26] : memref<1x1x1x4xf32, #tpu.memory_space<vmem>>, vector<1x1x1x4xf32>
    tpu.vector_store %arg9[%c0_23, %c0_24, %c0_25, %c0_26], %14 {strides = array<i32>} : memref<1x1x1x4xf32, #tpu.memory_space<vmem>>, vector<1x1x1x4xf32>,
    %16 = tpu.transpose %12, [1, 0] : vector<256x4xf32> -> vector<4x256xf32>
    %cst_27 = arith.constant dense<0.000000e+00> : vector<4x4xf32>
    %17 = tpu.matmul %16, %12, %cst_27 {dimension_numbers = #tpu.dot_dimension_numbers<[1], [0], [0], [1], [0, 0, 1, 1], [], []>} : vector<4x256xf32>, vector<256x4xf32>, vector<4x4xf32> -> vector<4x4xf32>
    %18 = vector.shape_cast %17 : vector<4x4xf32> to vector<1x4x4xf32>
    %c0_28 = arith.constant 0 : index
    %c0_29 = arith.constant 0 : index
    %c0_30 = arith.constant 0 : index
    %19 = vector.load %arg10[%c0_28, %c0_29, %c0_30] : memref<1x4x4xf32, #tpu.memory_space<vmem>>, vector<1x4x4xf32>
    tpu.vector_store %arg10[%c0_28, %c0_29, %c0_30], %18 {strides = array<i32>} : memref<1x4x4xf32, #tpu.memory_space<vmem>>, vector<1x4x4xf32>,
    %cst_31 = arith.constant 0.000000e+00 : f32
    %20 = vector.broadcast %cst_31 : f32 to vector<256x8xf32>
    %c0_32 = arith.constant 0 : index
    %c0_33 = arith.constant 0 : index
    %c0_34 = arith.constant 0 : index
    %21 = vector.load %arg11[%c0_32, %c0_33, %c0_34] : memref<18x18x4xf32, #tpu.memory_space<vmem>>, vector<16x16x4xf32>
    %22 = vector.shape_cast %21 : vector<16x16x4xf32> to vector<256x4xf32>
    %c0_35 = arith.constant 0 : index
    %c0_36 = arith.constant 0 : index
    %23 = vector.load %arg5[%c0_35, %c0_36] : memref<36x8xf32, #tpu.memory_space<vmem>>, vector<4x8xf32>
    %cst_37 = arith.constant dense<0.000000e+00> : vector<256x8xf32>
    %24 = tpu.matmul %22, %23, %cst_37 {dimension_numbers = #tpu.dot_dimension_numbers<[1], [0], [0], [1], [0, 0, 1, 1], [], []>} : vector<256x4xf32>, vector<4x8xf32>, vector<256x8xf32> -> vector<256x8xf32>
    %25 = arith.addf %20, %24 : vector<256x8xf32>
    %c0_38 = arith.constant 0 : index
    %c1_39 = arith.constant 1 : index
    %c0_40 = arith.constant 0 : index
    %26 = vector.load %arg11[%c0_38, %c1_39, %c0_40] : memref<18x18x4xf32, #tpu.memory_space<vmem>>, vector<16x16x4xf32>
    %27 = vector.shape_cast %26 : vector<16x16x4xf32> to vector<256x4xf32>
    %c4 = arith.constant 4 : index
    %c0_41 = arith.constant 0 : index
    %28 = vector.load %arg5[%c4, %c0_41] : memref<36x8xf32, #tpu.memory_space<vmem>>, vector<4x8xf32>
    %cst_42 = arith.constant dense<0.000000e+00> : vector<256x8xf32>
    %29 = tpu.matmul %27, %28, %cst_42 {dimension_numbers = #tpu.dot_dimension_numbers<[1], [0], [0], [1], [0, 0, 1, 1], [], []>} : vector<256x4xf32>, vector<4x8xf32>, vector<256x8xf32> -> vector<256x8xf32>
    %30 = arith.addf %25, %29 : vector<256x8xf32>
    %c0_43 = arith.constant 0 : index
    %c2 = arith.constant 2 : index
    %c0_44 = arith.constant 0 : index
    %31 = vector.load %arg11[%c0_43, %c2, %c0_44] : memref<18x18x4xf32, #tpu.memory_space<vmem>>, vector<16x16x4xf32>
    %32 = vector.shape_cast %31 : vector<16x16x4xf32> to vector<256x4xf32>
    %c8 = arith.constant 8 : index
    %c0_45 = arith.constant 0 : index
    %33 = vector.load %arg5[%c8, %c0_45] : memref<36x8xf32, #tpu.memory_space<vmem>>, vector<4x8xf32>
    %cst_46 = arith.constant dense<0.000000e+00> : vector<256x8xf32>
    %34 = tpu.matmul %32, %33, %cst_46 {dimension_numbers = #tpu.dot_dimension_numbers<[1], [0], [0], [1], [0, 0, 1, 1], [], []>} : vector<256x4xf32>, vector<4x8xf32>, vector<256x8xf32> -> vector<256x8xf32>
    %35 = arith.addf %30, %34 : vector<256x8xf32>
    %c1_47 = arith.constant 1 : index
    %c0_48 = arith.constant 0 : index
    %c0_49 = arith.constant 0 : index
    %36 = vector.load %arg11[%c1_47, %c0_48, %c0_49] : memref<18x18x4xf32, #tpu.memory_space<vmem>>, vector<16x16x4xf32>
    %37 = vector.shape_cast %36 : vector<16x16x4xf32> to vector<256x4xf32>
    %c12 = arith.constant 12 : index
    %c0_50 = arith.constant 0 : index
    %38 = vector.load %arg5[%c12, %c0_50] : memref<36x8xf32, #tpu.memory_space<vmem>>, vector<4x8xf32>
    %cst_51 = arith.constant dense<0.000000e+00> : vector<256x8xf32>
    %39 = tpu.matmul %37, %38, %cst_51 {dimension_numbers = #tpu.dot_dimension_numbers<[1], [0], [0], [1], [0, 0, 1, 1], [], []>} : vector<256x4xf32>, vector<4x8xf32>, vector<256x8xf32> -> vector<256x8xf32>
    %40 = arith.addf %35, %39 : vector<256x8xf32>
    %c1_52 = arith.constant 1 : index
    %c1_53 = arith.constant 1 : index
    %c0_54 = arith.constant 0 : index
    %41 = vector.load %arg11[%c1_52, %c1_53, %c0_54] : memref<18x18x4xf32, #tpu.memory_space<vmem>>, vector<16x16x4xf32>
    %42 = vector.shape_cast %41 : vector<16x16x4xf32> to vector<256x4xf32>
    %c16 = arith.constant 16 : index
    %c0_55 = arith.constant 0 : index
    %43 = vector.load %arg5[%c16, %c0_55] : memref<36x8xf32, #tpu.memory_space<vmem>>, vector<4x8xf32>
    %cst_56 = arith.constant dense<0.000000e+00> : vector<256x8xf32>
    %44 = tpu.matmul %42, %43, %cst_56 {dimension_numbers = #tpu.dot_dimension_numbers<[1], [0], [0], [1], [0, 0, 1, 1], [], []>} : vector<256x4xf32>, vector<4x8xf32>, vector<256x8xf32> -> vector<256x8xf32>
    %45 = arith.addf %40, %44 : vector<256x8xf32>
    %c1_57 = arith.constant 1 : index
    %c2_58 = arith.constant 2 : index
    %c0_59 = arith.constant 0 : index
    %46 = vector.load %arg11[%c1_57, %c2_58, %c0_59] : memref<18x18x4xf32, #tpu.memory_space<vmem>>, vector<16x16x4xf32>
    %47 = vector.shape_cast %46 : vector<16x16x4xf32> to vector<256x4xf32>
    %c20 = arith.constant 20 : index
    %c0_60 = arith.constant 0 : index
    %48 = vector.load %arg5[%c20, %c0_60] : memref<36x8xf32, #tpu.memory_space<vmem>>, vector<4x8xf32>
    %cst_61 = arith.constant dense<0.000000e+00> : vector<256x8xf32>
    %49 = tpu.matmul %47, %48, %cst_61 {dimension_numbers = #tpu.dot_dimension_numbers<[1], [0], [0], [1], [0, 0, 1, 1], [], []>} : vector<256x4xf32>, vector<4x8xf32>, vector<256x8xf32> -> vector<256x8xf32>
    %50 = arith.addf %45, %49 : vector<256x8xf32>
    %c2_62 = arith.constant 2 : index
    %c0_63 = arith.constant 0 : index
    %c0_64 = arith.constant 0 : index
    %51 = vector.load %arg11[%c2_62, %c0_63, %c0_64] : memref<18x18x4xf32, #tpu.memory_space<vmem>>, vector<16x16x4xf32>
    %52 = vector.shape_cast %51 : vector<16x16x4xf32> to vector<256x4xf32>
    %c24 = arith.constant 24 : index
    %c0_65 = arith.constant 0 : index
    %53 = vector.load %arg5[%c24, %c0_65] : memref<36x8xf32, #tpu.memory_space<vmem>>, vector<4x8xf32>
    %cst_66 = arith.constant dense<0.000000e+00> : vector<256x8xf32>
    %54 = tpu.matmul %52, %53, %cst_66 {dimension_numbers = #tpu.dot_dimension_numbers<[1], [0], [0], [1], [0, 0, 1, 1], [], []>} : vector<256x4xf32>, vector<4x8xf32>, vector<256x8xf32> -> vector<256x8xf32>
    %55 = arith.addf %50, %54 : vector<256x8xf32>
    %c2_67 = arith.constant 2 : index
    %c1_68 = arith.constant 1 : index
    %c0_69 = arith.constant 0 : index
    %56 = vector.load %arg11[%c2_67, %c1_68, %c0_69] : memref<18x18x4xf32, #tpu.memory_space<vmem>>, vector<16x16x4xf32>
    %57 = vector.shape_cast %56 : vector<16x16x4xf32> to vector<256x4xf32>
    %c28 = arith.constant 28 : index
    %c0_70 = arith.constant 0 : index
    %58 = vector.load %arg5[%c28, %c0_70] : memref<36x8xf32, #tpu.memory_space<vmem>>, vector<4x8xf32>
    %cst_71 = arith.constant dense<0.000000e+00> : vector<256x8xf32>
    %59 = tpu.matmul %57, %58, %cst_71 {dimension_numbers = #tpu.dot_dimension_numbers<[1], [0], [0], [1], [0, 0, 1, 1], [], []>} : vector<256x4xf32>, vector<4x8xf32>, vector<256x8xf32> -> vector<256x8xf32>
    %60 = arith.addf %55, %59 : vector<256x8xf32>
    %c2_72 = arith.constant 2 : index
    %c2_73 = arith.constant 2 : index
    %c0_74 = arith.constant 0 : index
    %61 = vector.load %arg11[%c2_72, %c2_73, %c0_74] : memref<18x18x4xf32, #tpu.memory_space<vmem>>, vector<16x16x4xf32>
    %62 = vector.shape_cast %61 : vector<16x16x4xf32> to vector<256x4xf32>
    %c32 = arith.constant 32 : index
    %c0_75 = arith.constant 0 : index
    %63 = vector.load %arg5[%c32, %c0_75] : memref<36x8xf32, #tpu.memory_space<vmem>>, vector<4x8xf32>
    %cst_76 = arith.constant dense<0.000000e+00> : vector<256x8xf32>
    %64 = tpu.matmul %62, %63, %cst_76 {dimension_numbers = #tpu.dot_dimension_numbers<[1], [0], [0], [1], [0, 0, 1, 1], [], []>} : vector<256x4xf32>, vector<4x8xf32>, vector<256x8xf32> -> vector<256x8xf32>
    %65 = arith.addf %60, %64 : vector<256x8xf32>
    %66 = vector.shape_cast %65 : vector<256x8xf32> to vector<1x16x16x8xf32>
    %c0_77 = arith.constant 0 : index
    %c0_78 = arith.constant 0 : index
    %c0_79 = arith.constant 0 : index
    %c0_80 = arith.constant 0 : index
    %67 = vector.load %arg6[%c0_77, %c0_78, %c0_79, %c0_80] : memref<1x16x16x8xf32, #tpu.memory_space<vmem>>, vector<1x16x16x8xf32>
    tpu.vector_store %arg6[%c0_77, %c0_78, %c0_79, %c0_80], %66 {strides = array<i32>} : memref<1x16x16x8xf32, #tpu.memory_space<vmem>>, vector<1x16x16x8xf32>,
    %cst_81 = arith.constant dense<0.000000e+00> : vector<8xf32>
    %68 = vector.multi_reduction <add>, %65, %cst_81 [0] : vector<256x8xf32> to vector<8xf32>
    %69 = vector.shape_cast %68 : vector<8xf32> to vector<1x1x1x8xf32>
    %c0_82 = arith.constant 0 : index
    %c0_83 = arith.constant 0 : index
    %c0_84 = arith.constant 0 : index
    %c0_85 = arith.constant 0 : index
    %70 = vector.load %arg7[%c0_82, %c0_83, %c0_84, %c0_85] : memref<1x1x1x8xf32, #tpu.memory_space<vmem>>, vector<1x1x1x8xf32>
    tpu.vector_store %arg7[%c0_82, %c0_83, %c0_84, %c0_85], %69 {strides = array<i32>} : memref<1x1x1x8xf32, #tpu.memory_space<vmem>>, vector<1x1x1x8xf32>,
    %71 = arith.mulf %65, %65 : vector<256x8xf32>
    %cst_86 = arith.constant dense<0.000000e+00> : vector<8xf32>
    %72 = vector.multi_reduction <add>, %71, %cst_86 [0] : vector<256x8xf32> to vector<8xf32>
    %73 = vector.shape_cast %72 : vector<8xf32> to vector<1x1x1x8xf32>
    %c0_87 = arith.constant 0 : index
    %c0_88 = arith.constant 0 : index
    %c0_89 = arith.constant 0 : index
    %c0_90 = arith.constant 0 : index
    %74 = vector.load %arg8[%c0_87, %c0_88, %c0_89, %c0_90] : memref<1x1x1x8xf32, #tpu.memory_space<vmem>>, vector<1x1x1x8xf32>
    tpu.vector_store %arg8[%c0_87, %c0_88, %c0_89, %c0_90], %73 {strides = array<i32>} : memref<1x1x1x8xf32, #tpu.memory_space<vmem>>, vector<1x1x1x8xf32>,
    return
  }
  func.func @transform_0(%arg0: i32, %arg1: i32) -> (i32, i32, i32, i32) {
    %c0_i32 = arith.constant 0 : i32
    %c0_i32_0 = arith.constant 0 : i32
    %c0_i32_1 = arith.constant 0 : i32
    %c0_i32_2 = arith.constant 0 : i32
    return %arg0, %c0_i32, %c0_i32_0, %c0_i32_1 : i32, i32, i32, i32
  }
  func.func @transform_1(%arg0: i32, %arg1: i32) -> (i32, i32, i32, i32) {
    %c0_i32 = arith.constant 0 : i32
    %c0_i32_0 = arith.constant 0 : i32
    %c0_i32_1 = arith.constant 0 : i32
    %c0_i32_2 = arith.constant 0 : i32
    %c0_i32_3 = arith.constant 0 : i32
    return %c0_i32, %c0_i32_0, %c0_i32_1, %c0_i32_2 : i32, i32, i32, i32
  }
  func.func @transform_2(%arg0: i32, %arg1: i32) -> (i32, i32, i32, i32) {
    %c0_i32 = arith.constant 0 : i32
    %c0_i32_0 = arith.constant 0 : i32
    %c0_i32_1 = arith.constant 0 : i32
    %c0_i32_2 = arith.constant 0 : i32
    %c0_i32_3 = arith.constant 0 : i32
    return %c0_i32, %c0_i32_0, %c0_i32_1, %c0_i32_2 : i32, i32, i32, i32
  }
  func.func @transform_3(%arg0: i32, %arg1: i32) -> (i32, i32) {
    %c0_i32 = arith.constant 0 : i32
    %c0_i32_0 = arith.constant 0 : i32
    return %c0_i32, %arg1 : i32, i32
  }
  func.func @transform_4(%arg0: i32, %arg1: i32) -> (i32, i32, i32, i32) {
    %c0_i32 = arith.constant 0 : i32
    %c0_i32_0 = arith.constant 0 : i32
    %c0_i32_1 = arith.constant 0 : i32
    return %arg0, %c0_i32, %c0_i32_0, %arg1 : i32, i32, i32, i32
  }
  func.func @transform_5(%arg0: i32, %arg1: i32) -> (i32, i32, i32, i32) {
    %c0_i32 = arith.constant 0 : i32
    %c0_i32_0 = arith.constant 0 : i32
    %c0_i32_1 = arith.constant 0 : i32
    return %arg0, %c0_i32, %c0_i32_0, %arg1 : i32, i32, i32, i32
  }
  func.func @transform_6(%arg0: i32, %arg1: i32) -> (i32, i32, i32, i32) {
    %c0_i32 = arith.constant 0 : i32
    %c0_i32_0 = arith.constant 0 : i32
    %c0_i32_1 = arith.constant 0 : i32
    return %arg0, %c0_i32, %c0_i32_0, %arg1 : i32, i32, i32, i32
  }
  func.func @transform_7(%arg0: i32, %arg1: i32) -> (i32, i32, i32, i32) {
    %c0_i32 = arith.constant 0 : i32
    %c0_i32_0 = arith.constant 0 : i32
    %c0_i32_1 = arith.constant 0 : i32
    %c0_i32_2 = arith.constant 0 : i32
    return %arg0, %c0_i32, %c0_i32_0, %c0_i32_1 : i32, i32, i32, i32
  }
  func.func @transform_8(%arg0: i32, %arg1: i32) -> (i32, i32, i32) {
    %c0_i32 = arith.constant 0 : i32
    %c0_i32_0 = arith.constant 0 : i32
    %c0_i32_1 = arith.constant 0 : i32
    return %arg0, %c0_i32, %c0_i32_0 : i32, i32, i32
  }
}

</mosaic_0001>

<bundles_post_ra>
// kernel: tpu_custom_call.1
= control target key start
LH: loop header
LB: loop body
LE: loop exit
PB: predicated region body
PF: predicated region fallthrough
CT: control target
= control target key end

     0   :  { %s8086_s0 = inlined_call_operand.vmem [shape: f32[2,16,16,4], index: 0, kind: input, shape index: {}]   ;;  %s8087_s1 = inlined_call_operand.vmem [shape: f32[1,1,1,4], index: 1, kind: input, shape index: {}]   ;;  %s8088_s2 = inlined_call_operand.vmem [shape: f32[1,1,1,4], index: 2, kind: input, shape index: {}]   ;;  %s8089_s3 = inlined_call_operand.vmem [shape: f32[36,8], index: 3, kind: input, shape index: {}]   ;;  %s8090_s4 = inlined_call_operand.vmem [shape: f32[2,16,16,8], index: 4, kind: output, shape index: {0}]   ;;  %s8091_s5 = inlined_call_operand.hbm [shape: f32[2,1,1,8], index: 5, kind: output, shape index: {1}]   ;;  %s8092_s6 = inlined_call_operand.hbm [shape: f32[2,1,1,8], index: 6, kind: output, shape index: {2}]   ;;  %s8093_s7 = inlined_call_operand.hbm [shape: f32[2,1,1,4], index: 7, kind: output, shape index: {3}]   ;;  %s8094_s8 = inlined_call_operand.hbm [shape: f32[2,4,4], index: 8, kind: output, shape index: {4}]  }
   0x1   :  { %8150 = sst [smem:[#allocation41_spill]] %s8086_s0 }
   0x2   :  { %8151 = sst [smem:[#allocation42_spill]] %s8089_s3 }
   0x3   :  { %14 = vsyncpa [#allocation4], 0 }
   0x4   :  { %16 = vsyncpa [#allocation4 + $0x1], 0 }
   0x5   :  { %17 = vsyncpa [#allocation6], 0 }
   0x6   :  { %19 = vsyncpa [#allocation6 + $0x1], 0 }
   0x7   :  { %20 = vsyncpa [#allocation9], 0 }
   0x8   :  { %22 = vsyncpa [#allocation9 + $0x1], 0  ;;  %s6400_s2 = smov 0   ;;  %s6402_s26 = smov 0  }
   0x9   :  { %s6404_s27 = smov 0   ;;  %s6406_s28 = smov 0  }
   0xa   :  { %s6408_s29 = smov 0   ;;  %s6410_s30 = smov 0  }
   0xb LB: > { %s4651_s9 = sadd.s32 4294967295, %s6348_s30   ;;  %s8147_s10 = sadd.s32 4294967294, %s6348_s30   ;;  %s6348_s30 = sphi %s6410_s30, %s28_s30   ;;  %s6344_s29 = sphi %s6408_s29, %s8235_s29   ;;  %s6340_s28 = sphi %s6406_s28, %s8234_s28   ;;  %s6336_s27 = sphi %s6404_s27, %s8233_s27   ;;  %s6332_s26 = sphi %s6402_s26, %s8232_s26   ;;  %s6328_s2 = sphi %s6400_s2, %s8231_s2  }
   0xc   : > { %s40_s11 = sadd.s32 1, %s6344_s29  ;;  %s171_s12 = sadd.s32 1, %s6336_s27 }
   0xd   : > { %p42_p0 = scmp.ge.s32.totalorder %s40_s11, 2  ;;  %p181_p1 = scmp.ne.s32.totalorder %s6336_s27, %s6332_s26 }
   0xe   : > { %p182_p2 = scmp.eq.s32.totalorder %s4651_s9, 1  ;;  %p187_p3 = scmp.ne.s32.totalorder %s6332_s26, %s6328_s2 }
   0xf   : > { %s8237_s11 = smov (%p42_p0, %s40_s11), 0  ;;  %p188_p5 = scmp.eq.s32.totalorder %s8147_s10, 1 }
  0x10   : > { %p6442_p4 = por %p182_p2, %p181_p1  ;;  %s166_s14 = ssub.s32 %s6344_s29, %s8237_s11 }
  0x11   : > { %p4656_p6 = scmp.ge.s32.totalorder %s6348_s30, 1  ;;  %p169_p7 = scmp.eq.s32.totalorder %s166_s14, 0 }
  0x12   : > { %p6451_p8 = por %p188_p5, %p187_p3  ;;  %p307_p9 = scmp.lt.s32.totalorder %s6348_s30, 3 }
  0x13   : > { %s6457_s16 = scalar_select %p169_p7, %s6336_s27, %s171_s12  }
  0x14   : > { %p308_p10 = pnand %p4656_p6, %p307_p9 }
  0x16   : > { %311 = sbr.rel (%p308_p10) target bundleno = 804 (0x324), region = 36 }
  0x1d   : > { %vm889_vm0 = vcmask 1043456   ;;  %s8154_s3 = sld [smem:[#allocation42_spill]]  ;;  %p365_p11 = scmp.lt.s32.totalorder %s6340_s28, 1  ;;  %vm414_vm1 = vcmask 31744   ;;  %vm424_vm2 = vcmask 24576   ;;  %v6350_v2 = vmov 0.0  }
  0x1e   : > { %415 = vst.msk [vmem:[#allocation2] sm:$0xff] %vm414_vm1, %v6350_v2  ;;  %416 = vst.msk [vmem:[#allocation2 + $0x8] sm:$0xff] %vm414_vm1, %v6350_v2  ;;  %s8155_s0 = sld [smem:[#allocation41_spill]]  ;;  %vm417_vm3 = vcmask 25600   ;;  %s7438_s20 = sand.u32 1, %s6332_s26   ;;  %vm725_vm4 = vcmask 27648  }
  0x1f   : > { %420 = vst.msk [vmem:[#allocation2 + $0x198] sm:$0xff] %vm414_vm1, %v6350_v2  ;;  %421 = vst.msk [vmem:[#allocation2 + $0x1a0] sm:$0xff] %vm414_vm1, %v6350_v2  ;;  %s6479_s21 = scalar_select %p365_p11, %s6340_s28, 1  ;;  %vm4166_vm5 = vcmask 64512  }
  0x20   : > { %441 = vst.msk [vmem:[#allocation2 + $0x29] sm:$0x1] %vm424_vm2, %v6350_v2  ;;  %425 = vst.msk [vmem:[#allocation2 + $0x18] sm:$0x1] %vm424_vm2, %v6350_v2  ;;  %s4657_s23 = sshll.u32 %s7438_s20, 2 }
  0x21   : > { %426 = vst.msk [vmem:[#allocation2 + $0x30] sm:$0x1] %vm424_vm2, %v6350_v2  ;;  %427 = vst.msk [vmem:[#allocation2 + $0x48] sm:$0x1] %vm424_vm2, %v6350_v2  ;;  %s4966_s22 = sshll.u32 %s6479_s21, 8  ;;  %s7449_s24 = scalar_lea.vmem [#allocation8], %s4657_s23 }
  0x22   : > { %428 = vst.msk [vmem:[#allocation2 + $0x60] sm:$0x1] %vm424_vm2, %v6350_v2  ;;  %429 = vst.msk [vmem:[#allocation2 + $0x78] sm:$0x1] %vm424_vm2, %v6350_v2  ;;  %s7604_s12 = scalar_lea.vmem %s8090_s4, %s4966_s22  ;;  %s8148_s21 = scalar_lea.vmem [#allocation7], %s7438_s20 }
  0x23   : > { %v2252_v0 = vld [vmem:[%s8154_s3 + $0x10] sm:$0xf]  ;;  %v6467_v1 = vld [vmem:[%s8154_s3 + $0x14] sm:$0xf]  ;;  %430 = vst.msk [vmem:[#allocation2 + $0x90] sm:$0x1] %vm424_vm2, %v6350_v2 }
  0x24   : > { %5782 = vmatprep.subr.msk.mxu1 %vm889_vm0, %v2252_v0  ;;  %431 = vst.msk [vmem:[#allocation2 + $0xa8] sm:$0x1] %vm424_vm2, %v6350_v2  ;;  %432 = vst.msk [vmem:[#allocation2 + $0xc0] sm:$0x1] %vm424_vm2, %v6350_v2  ;;  %s6553_s25 = scalar_lea.vmem %s8155_s0, %s4966_s22  ;;  %v6618_v32 = vld [vmem:[%s8154_s3 + $0x18] sm:$0xf] }
  0x25   : > { %5783 = vmatpush3.msk.msra.mxu1 %vm889_vm0, %v2252_v0  ;;  %433 = vst.msk [vmem:[#allocation2 + $0xd8] sm:$0x1] %vm424_vm2, %v6350_v2  ;;  %434 = vst.msk [vmem:[#allocation2 + $0xf0] sm:$0x1] %vm424_vm2, %v6350_v2  ;;  %v388_v3 = vld [vmem:[%s6553_s25 + $0x30] sm:$0xff]  ;;  %v389_v4 = vld [vmem:[%s6553_s25 + $0x38] sm:$0xff] }
  0x26   : > { %435 = vst.msk [vmem:[#allocation2 + $0x108] sm:$0x1] %vm424_vm2, %v6350_v2  ;;  %436 = vst.msk [vmem:[#allocation2 + $0x120] sm:$0x1] %vm424_vm2, %v6350_v2  ;;  %5550 = vmatprep.subr.msk.mxu1 %vm889_vm0, %v6467_v1  ;;  %v382_v5 = vld [vmem:[%s6553_s25] sm:$0xff]  ;;  %v391_v8 = vld [vmem:[%s6553_s25 + $0x48] sm:$0xff] }
  0x27   : > { %437 = vst.msk [vmem:[#allocation2 + $0x138] sm:$0x1] %vm424_vm2, %v6350_v2  ;;  %438 = vst.msk [vmem:[#allocation2 + $0x150] sm:$0x1] %vm424_vm2, %v6350_v2  ;;  %v398_v6 = vld [vmem:[%s6553_s25 + $0x80] sm:$0xff]  ;;  %v383_v9 = vld [vmem:[%s6553_s25 + $0x8] sm:$0xff] }
  0x28   : > { %439 = vst.msk [vmem:[#allocation2 + $0x168] sm:$0x1] %vm424_vm2, %v6350_v2  ;;  %440 = vst.msk [vmem:[#allocation2 + $0x180] sm:$0x1] %vm424_vm2, %v6350_v2  ;;  %v390_v7 = vld [vmem:[%s6553_s25 + $0x40] sm:$0xff]  ;;  %v399_v10 = vld [vmem:[%s6553_s25 + $0x88] sm:$0xff] }
  0x29   : > { %442 = vst.msk [vmem:[#allocation2 + $0x41] sm:$0x1] %vm424_vm2, %v6350_v2  ;;  %443 = vst.msk [vmem:[#allocation2 + $0x59] sm:$0x1] %vm424_vm2, %v6350_v2  ;;  %v392_v11 = vld [vmem:[%s6553_s25 + $0x50] sm:$0xff]  ;;  %v393_v12 = vld [vmem:[%s6553_s25 + $0x58] sm:$0xff] }
  0x2a   : > { %444 = vst.msk [vmem:[#allocation2 + $0x71] sm:$0x1] %vm424_vm2, %v6350_v2  ;;  %445 = vst.msk [vmem:[#allocation2 + $0x89] sm:$0x1] %vm424_vm2, %v6350_v2  ;;  %v384_v13 = vld [vmem:[%s6553_s25 + $0x10] sm:$0xff]  ;;  %v394_v15 = vld [vmem:[%s6553_s25 + $0x60] sm:$0xff] }
  0x2b   : > { %446 = vst.msk [vmem:[#allocation2 + $0xa1] sm:$0x1] %vm424_vm2, %v6350_v2  ;;  %447 = vst.msk [vmem:[#allocation2 + $0xb9] sm:$0x1] %vm424_vm2, %v6350_v2  ;;  %v400_v14 = vld [vmem:[%s6553_s25 + $0x90] sm:$0xff]  ;;  %v395_v16 = vld [vmem:[%s6553_s25 + $0x68] sm:$0xff] }
  0x2c   : > { %448 = vst.msk [vmem:[#allocation2 + $0xd1] sm:$0x1] %vm424_vm2, %v6350_v2  ;;  %449 = vst.msk [vmem:[#allocation2 + $0xe9] sm:$0x1] %vm424_vm2, %v6350_v2  ;;  %v385_v17 = vld [vmem:[%s6553_s25 + $0x18] sm:$0xff]  ;;  %v396_v19 = vld [vmem:[%s6553_s25 + $0x70] sm:$0xff] }
  0x2d   : > { %450 = vst.msk [vmem:[#allocation2 + $0x101] sm:$0x1] %vm424_vm2, %v6350_v2  ;;  %451 = vst.msk [vmem:[#allocation2 + $0x119] sm:$0x1] %vm424_vm2, %v6350_v2  ;;  %v401_v18 = vld [vmem:[%s6553_s25 + $0x98] sm:$0xff]  ;;  %v386_v21 = vld [vmem:[%s6553_s25 + $0x20] sm:$0xff] }
  0x2e   : > { %452 = vst.msk [vmem:[#allocation2 + $0x131] sm:$0x1] %vm424_vm2, %v6350_v2  ;;  %453 = vst.msk [vmem:[#allocation2 + $0x149] sm:$0x1] %vm424_vm2, %v6350_v2  ;;  %v397_v20 = vld [vmem:[%s6553_s25 + $0x78] sm:$0xff]  ;;  %v402_v22 = vld [vmem:[%s6553_s25 + $0xa0] sm:$0xff] }
  0x2f   : > { %454 = vst.msk [vmem:[#allocation2 + $0x161] sm:$0x1] %vm424_vm2, %v6350_v2  ;;  %455 = vst.msk [vmem:[#allocation2 + $0x179] sm:$0x1] %vm424_vm2, %v6350_v2  ;;  %v387_v23 = vld [vmem:[%s6553_s25 + $0x28] sm:$0xff]  ;;  %v404_v25 = vld [vmem:[%s6553_s25 + $0xb0] sm:$0xff] }
  0x30   : > { %456 = vst.msk [vmem:[#allocation2 + $0x191] sm:$0x1] %vm424_vm2, %v6350_v2  ;;  %v403_v24 = vld [vmem:[%s6553_s25 + $0xa8] sm:$0xff]  ;;  %v405_v26 = vld [vmem:[%s6553_s25 + $0xb8] sm:$0xff]  ;;  %v406_v47 = vld [vmem:[%s6553_s25 + $0xc0] sm:$0xff]  ;;  %s4963_s22 = sshll.u32 %s6340_s28, 6 }
  0x31   : > { %463 = vst.msk [vmem:[#allocation2 + $0x61] sm:$0xff] %vm414_vm1, %v388_v3  ;;  %464 = vst.msk [vmem:[#allocation2 + $0x69] sm:$0xff] %vm414_vm1, %v389_v4  ;;  %v407_v48 = vld [vmem:[%s6553_s25 + $0xc8] sm:$0xff]  ;;  %v408_v49 = vld [vmem:[%s6553_s25 + $0xd0] sm:$0xff]  ;;  %s7670_s18 = scalar_lea.hbm %s8094_s8, %s4963_s22  ;;  %s4450_s19 = sshll.u32 %s7449_s24, 4  ;;  %s7678_s19 = int_to_ptr.vmem [resolvable:$true] %s4450_s19 }
  0x32   : > { %457 = vst.msk [vmem:[#allocation2 + $0x19] sm:$0xff] %vm414_vm1, %v382_v5  ;;  %473 = vst.msk [vmem:[#allocation2 + $0xd9] sm:$0xff] %vm414_vm1, %v398_v6  ;;  %v409_v50 = vld [vmem:[%s6553_s25 + $0xd8] sm:$0xff]  ;;  %v410_v51 = vld [vmem:[%s6553_s25 + $0xe0] sm:$0xff]  ;;  %s4393_s23 = scalar_lea.sflag [#allocation9], %s7438_s20 }
  0x33   : > { %465 = vst.msk [vmem:[#allocation2 + $0x79] sm:$0xff] %vm414_vm1, %v390_v7  ;;  %466 = vst.msk [vmem:[#allocation2 + $0x81] sm:$0xff] %vm414_vm1, %v391_v8  ;;  %v411_v52 = vld [vmem:[%s6553_s25 + $0xe8] sm:$0xff]  ;;  %v412_v53 = vld [vmem:[%s6553_s25 + $0xf0] sm:$0xff] }
  0x34   : > { %458 = vst.msk [vmem:[#allocation2 + $0x21] sm:$0xff] %vm414_vm1, %v383_v9  ;;  %474 = vst.msk [vmem:[#allocation2 + $0xe1] sm:$0xff] %vm414_vm1, %v399_v10  ;;  %v413_v54 = vld [vmem:[%s6553_s25 + $0xf8] sm:$0xff]  ;;  %s6351_s25 = smov [#allocation8]  }
  0x35   : > { %467 = vst.msk [vmem:[#allocation2 + $0x91] sm:$0xff] %vm414_vm1, %v392_v11  ;;  %468 = vst.msk [vmem:[#allocation2 + $0x99] sm:$0xff] %vm414_vm1, %v393_v12  ;;  %s6182_s1 = sshll.u32 %s6351_s25, 4  ;;  %s6183_s1 = int_to_ptr.vmem [resolvable:$false] %s6182_s1 }
  0x36   : > { %459 = vst.msk [vmem:[#allocation2 + $0x31] sm:$0xff] %vm414_vm1, %v384_v13  ;;  %475 = vst.msk [vmem:[#allocation2 + $0xf1] sm:$0xff] %vm414_vm1, %v400_v14  ;;  %s6184_s22 = scalar_lea.vmem %s6183_s1, 128  ;;  %p6185_p1 = scmp.lt.s32.totalorder %s7678_s19, %s6183_s1 }
  0x37   : > { %469 = vst.msk [vmem:[#allocation2 + $0xa9] sm:$0xff] %vm414_vm1, %v394_v15  ;;  %470 = vst.msk [vmem:[#allocation2 + $0xb1] sm:$0xff] %vm414_vm1, %v395_v16 }
  0x38   : > { %460 = vst.msk [vmem:[#allocation2 + $0x39] sm:$0xff] %vm414_vm1, %v385_v17  ;;  %476 = vst.msk [vmem:[#allocation2 + $0xf9] sm:$0xff] %vm414_vm1, %v401_v18  ;;  %v6600_v27 = vld [vmem:[#allocation2 + $0x61] sm:$0xff]  ;;  %v6602_v28 = vld [vmem:[#allocation2 + $0x69] sm:$0xff] }
  0x39   : > { %471 = vst.msk [vmem:[#allocation2 + $0xc1] sm:$0xff] %vm414_vm1, %v396_v19  ;;  %472 = vst.msk [vmem:[#allocation2 + $0xc9] sm:$0xff] %vm414_vm1, %v397_v20  ;;  %v6604_v29 = vld [vmem:[#allocation2 + $0x19] sm:$0xff]  ;;  %5511 = vmatprep.mubr.msk.f32.mxu1 %vm414_vm1, %v6600_v27  ;;  %v5764_v11 = vpack.c.bf16 %v6602_v28, %v6600_v27 }
  0x3a   : > { %461 = vst.msk [vmem:[#allocation2 + $0x49] sm:$0xff] %vm414_vm1, %v386_v21  ;;  %477 = vst.msk [vmem:[#allocation2 + $0x109] sm:$0xff] %vm414_vm1, %v402_v22  ;;  %v6611_v30 = vld [vmem:[#allocation2 + $0xd9] sm:$0xff]  ;;  %5512 = vmatmul.mubr.msk.f32.vlgmr.msra.gmra.mrb[0].mxu1 %vm414_vm1, %v6602_v28  ;;  %v6630_v36 = vld [vmem:[#allocation2 + $0x81] sm:$0xff] }
  0x3b   : > { %462 = vst.msk [vmem:[#allocation2 + $0x51] sm:$0xff] %vm414_vm1, %v387_v23  ;;  %478 = vst.msk [vmem:[#allocation2 + $0x111] sm:$0xff] %vm414_vm1, %v403_v24  ;;  %v6613_v31 = vld [vmem:[#allocation2 + $0x79] sm:$0xff]  ;;  %v6111_v33 = vpack.i.bf16 %v6604_v29, %v6611_v30  ;;  %v6624_v34 = vld [vmem:[#allocation2 + $0x21] sm:$0xff]  ;;  %5551 = vmatpush3.msk.msra.mxu1 %vm889_vm0, %v6467_v1 }
  0x3c   : > { %479 = vst.msk [vmem:[#allocation2 + $0x121] sm:$0xff] %vm414_vm1, %v404_v25  ;;  %480 = vst.msk [vmem:[#allocation2 + $0x129] sm:$0xff] %vm414_vm1, %v405_v26  ;;  %v6626_v35 = vld [vmem:[#allocation2 + $0xe1] sm:$0xff]  ;;  %5514 = vmatprep.mubr.msk.f32.mxu1 %vm414_vm1, %v6613_v31  ;;  %v6636_v38 = vld [vmem:[#allocation2 + $0x91] sm:$0xff]  ;;  %5600 = vmatprep.subr.msk.mxu1 %vm889_vm0, %v6618_v32  ;;  %v5752_v55 = vpack.c.bf16 %v6624_v34, %v6604_v29  ;;  %v5768_v16 = vpack.c.bf16 %v6630_v36, %v6613_v31 }
  0x3d   : > { %6112 = vxpose.xlu0.b32.start [1/16] (narrow) %v6111_v33, 8  ;;  %v6113_v37 = vpack.i.bf16 %v6624_v34, %v6626_v35  ;;  %v6640_v39 = vld [vmem:[#allocation2 + $0x31] sm:$0xff]  ;;  %v5750_v41 = vpack.c.bf16 %v6626_v35, %v6611_v30  ;;  %v6648_v42 = vld [vmem:[#allocation2 + $0x99] sm:$0xff]  ;;  %481 = vst.msk [vmem:[#allocation2 + $0x139] sm:$0xff] %vm414_vm1, %v406_v47  ;;  %482 = vst.msk [vmem:[#allocation2 + $0x141] sm:$0xff] %vm414_vm1, %v407_v48 }
  0x3e   : > { %v6642_v40 = vld [vmem:[#allocation2 + $0xf1] sm:$0xff]  ;;  %5515 = vmatmul.mubr.msk.f32.gmra.mrb[2].mxu1 %vm414_vm1, %v6630_v36  ;;  %v6652_v43 = vld [vmem:[#allocation2 + $0xa9] sm:$0xff]  ;;  %483 = vst.msk [vmem:[#allocation2 + $0x151] sm:$0xff] %vm414_vm1, %v408_v49  ;;  %484 = vst.msk [vmem:[#allocation2 + $0x159] sm:$0xff] %vm414_vm1, %v409_v50  ;;  %v5772_v21 = vpack.c.bf16 %v6648_v42, %v6636_v38 }
  0x3f   : > { %5517 = vmatprep.mubr.msk.f32.mxu1 %vm414_vm1, %v6636_v38  ;;  %v6654_v44 = vld [vmem:[#allocation2 + $0x39] sm:$0xff]  ;;  %5751 = vmatprep.subr.bf16.mxu0 %v5750_v41  ;;  %v6115_v46 = vpack.i.bf16 %v6640_v39, %v6642_v40  ;;  %485 = vst.msk [vmem:[#allocation2 + $0x169] sm:$0xff] %vm414_vm1, %v410_v51  ;;  %486 = vst.msk [vmem:[#allocation2 + $0x171] sm:$0xff] %vm414_vm1, %v411_v52  ;;  %v6682_v57 = vld [vmem:[#allocation2 + $0xb1] sm:$0xff] }
  0x40   : > { %v6656_v45 = vld [vmem:[#allocation2 + $0xf9] sm:$0xff]  ;;  %487 = vst.msk [vmem:[#allocation2 + $0x181] sm:$0xff] %vm414_vm1, %v412_v53  ;;  %488 = vst.msk [vmem:[#allocation2 + $0x189] sm:$0xff] %vm414_vm1, %v413_v54  ;;  %v6688_v59 = vld [vmem:[#allocation2 + $0xc1] sm:$0xff]  ;;  %5753 = vmatpush3.bf16.msra.mxu0 %v5752_v55  ;;  %v5756_v62 = vpack.c.bf16 %v6654_v44, %v6640_v39  ;;  %v5776_v26 = vpack.c.bf16 %v6682_v57, %v6652_v43 }
  0x41   : > { %6114 = vxpose.xlu0.b32.cont [2/16] (narrow) %v6113_v37, 8  ;;  %v5754_v56 = vpack.c.bf16 %v6656_v45, %v6642_v40  ;;  %v6117_v58 = vpack.i.bf16 %v6654_v44, %v6656_v45  ;;  %v6690_v60 = vld [vmem:[#allocation2 + $0x109] sm:$0xff]  ;;  %418 = vst.msk [vmem:[#allocation2 + $0x10] sm:$0x3] %vm417_vm3, %v6350_v2  ;;  %422 = vst.msk [vmem:[#allocation2 + $0x1a8] sm:$0x3] %vm417_vm3, %v6350_v2 }
  0x42   : > { %5518 = vmatmul.mubr.msk.f32.gmra.mrb[4].mxu1 %vm414_vm1, %v6648_v42  ;;  %v6692_v61 = vld [vmem:[#allocation2 + $0x111] sm:$0xff]  ;;  %v6696_v63 = vld [vmem:[#allocation2 + $0x49] sm:$0xff]  ;;  %v6809_v50 = vld [vmem:[#allocation2 + $0x1a] sm:$0xff] }
  0x43   : > { %5520 = vmatprep.mubr.msk.f32.mxu1 %vm414_vm1, %v6652_v43  ;;  %5755 = vmatprep.subr.bf16.mxu0 %v5754_v56  ;;  %v5758_v0 = vpack.c.bf16 %v6692_v61, %v6690_v60  ;;  %v6706_v1 = vld [vmem:[#allocation2 + $0xc9] sm:$0xff]  ;;  %v6708_v3 = vld [vmem:[#allocation2 + $0x51] sm:$0xff]  ;;  %v6119_v4 = vpack.i.bf16 %v6696_v63, %v6690_v60  ;;  %v6712_v5 = vld [vmem:[#allocation2 + $0x121] sm:$0xff]  ;;  %8156 = vst [vmem:[#allocation13_spill] sm:$0xff] %v6809_v50 }
  0x44   : > { %v6714_v6 = vld [vmem:[#allocation2 + $0x129] sm:$0xff]  ;;  %5757 = vmatpush3.bf16.msra.mxu0 %v5756_v62  ;;  %v5760_v2 = vpack.c.bf16 %v6708_v3, %v6696_v63  ;;  %v6121_v8 = vpack.i.bf16 %v6708_v3, %v6692_v61  ;;  %v6726_v9 = vld [vmem:[#allocation2 + $0x139] sm:$0xff]  ;;  %v6728_v10 = vld [vmem:[#allocation2 + $0x141] sm:$0xff]  ;;  %v6123_v13 = vpack.i.bf16 %v6600_v27, %v6712_v5  ;;  %v5780_v41 = vpack.c.bf16 %v6706_v1, %v6688_v59 }
  0x45   : > { %6116 = vxpose.xlu0.b32.cont [3/16] (narrow) %v6115_v46, 8  ;;  %5759 = vmatprep.subr.bf16.mxu0 %v5758_v0  ;;  %v5762_v7 = vpack.c.bf16 %v6714_v6, %v6712_v5  ;;  %v5766_v12 = vpack.c.bf16 %v6728_v10, %v6726_v9  ;;  %v6740_v14 = vld [vmem:[#allocation2 + $0x151] sm:$0xff]  ;;  %v6742_v15 = vld [vmem:[#allocation2 + $0x159] sm:$0xff]  ;;  %v6125_v18 = vpack.i.bf16 %v6602_v28, %v6714_v6  ;;  %v6789_v46 = vld [vmem:[%s8154_s3 + $0x4] sm:$0xf] }
  0x46   : > { %5521 = vmatmul.mubr.msk.f32.gmra.mrb[6].mxu1 %vm414_vm1, %v6682_v57  ;;  %v5770_v17 = vpack.c.bf16 %v6742_v15, %v6740_v14  ;;  %v6754_v19 = vld [vmem:[#allocation2 + $0x169] sm:$0xff]  ;;  %v6756_v20 = vld [vmem:[#allocation2 + $0x171] sm:$0xff]  ;;  %v6127_v23 = vpack.i.bf16 %v6613_v31, %v6726_v9  ;;  %v6129_v37 = vpack.i.bf16 %v6630_v36, %v6728_v10  ;;  %v6131_v47 = vpack.i.bf16 %v6636_v38, %v6740_v14  ;;  %v6824_v54 = vld [vmem:[%s8154_s3 + $0x1c] sm:$0xf] }
  0x47   : > { %5523 = vmatprep.mubr.msk.f32.mxu1 %vm414_vm1, %v6688_v59  ;;  %v5774_v22 = vpack.c.bf16 %v6756_v20, %v6754_v19  ;;  %v6768_v24 = vld [vmem:[#allocation2 + $0x181] sm:$0xff]  ;;  %v6770_v25 = vld [vmem:[#allocation2 + $0x189] sm:$0xff]  ;;  %v6133_v48 = vpack.i.bf16 %v6648_v42, %v6742_v15  ;;  %v6135_v49 = vpack.i.bf16 %v6652_v43, %v6754_v19  ;;  %v6137_v52 = vpack.i.bf16 %v6682_v57, %v6756_v20  ;;  %v6819_v53 = vld [vmem:[#allocation2 + $0x32] sm:$0xff] }
  0x48   : > { %5761 = vmatpush3.bf16.msra.mxu0 %v5760_v2  ;;  %v5778_v33 = vpack.c.bf16 %v6770_v25, %v6768_v24  ;;  %v6815_v51 = vld [vmem:[#allocation2 + $0x22] sm:$0xff]  ;;  %v6830_v55 = vld [vmem:[#allocation2 + $0x3a] sm:$0xff]  ;;  %v6139_v56 = vpack.i.bf16 %v6688_v59, %v6768_v24  ;;  %v6844_v62 = vld [vmem:[#allocation2 + $0x52] sm:$0xff] }
  0x49   : > { %6118 = vxpose.xlu0.b32.cont [4/16] (narrow) %v6117_v58, 8  ;;  %5763 = vmatprep.subr.bf16.mxu0 %v5762_v7  ;;  %8157 = vst [vmem:[#allocation14_spill] sm:$0xff] %v6815_v51  ;;  %v6836_v58 = vld [vmem:[#allocation2 + $0x4a] sm:$0xff]  ;;  %v6848_v0 = vld [vmem:[#allocation2 + $0x62] sm:$0xff]  ;;  %v6856_v2 = vld [vmem:[#allocation2 + $0x7a] sm:$0xff] }
  0x4a   : > { %5524 = vmatmul.mubr.msk.f32.gmra.mrb[8].mxu1 %vm414_vm1, %v6706_v1  ;;  %v6862_v7 = vld [vmem:[#allocation2 + $0x82] sm:$0xff] }
  0x4b   : > { %5526 = vmatprep.mubr.msk.f32.mxu1 %vm414_vm1, %v6611_v30  ;;  %8158 = vst [vmem:[#allocation15_spill] sm:$0xff] %v6862_v7 }
  0x4c   : > { %5765 = vmatpush3.bf16.msra.mxu0 %v5764_v11  ;;  %v6870_v11 = vld [vmem:[#allocation2 + $0x9a] sm:$0xff] }
  0x4d   : > { %6120 = vxpose.xlu0.b32.cont [5/16] (narrow) %v6119_v4, 8  ;;  %5767 = vmatprep.subr.bf16.mxu0 %v5766_v12  ;;  %v6854_v4 = vld [vmem:[#allocation2 + $0x6a] sm:$0xff]  ;;  %8160 = vst [vmem:[#allocation17_spill] sm:$0xff] %v6870_v11 }
  0x4e   : > { %5527 = vmatmul.mubr.msk.f32.gmra.mrb[10].mxu1 %vm414_vm1, %v6626_v35  ;;  %v6872_v12 = vld [vmem:[#allocation2 + $0xaa] sm:$0xff] }
  0x4f   : > { %5529 = vmatprep.mubr.msk.f32.mxu1 %vm414_vm1, %v6642_v40  ;;  %8161 = vst [vmem:[#allocation18_spill] sm:$0xff] %v6872_v12 }
  0x50   : > { %5769 = vmatpush3.bf16.msra.mxu0 %v5768_v16  ;;  %v6880_v16 = vld [vmem:[#allocation2 + $0xc2] sm:$0xff] }
  0x51   : > { %6122 = vxpose.xlu0.b32.cont [6/16] (narrow) %v6121_v8, 8  ;;  %5771 = vmatprep.subr.bf16.mxu0 %v5770_v17  ;;  %v6864_v8 = vld [vmem:[#allocation2 + $0x92] sm:$0xff]  ;;  %8163 = vst [vmem:[#allocation20_spill] sm:$0xff] %v6880_v16  ;;  %v6886_v17 = vld [vmem:[#allocation2 + $0xca] sm:$0xff] }
  0x52   : > { %5530 = vmatmul.mubr.msk.f32.gmra.mrb[12].mxu1 %vm414_vm1, %v6656_v45  ;;  %8159 = vst [vmem:[#allocation16_spill] sm:$0xff] %v6864_v8  ;;  %8164 = vst [vmem:[#allocation21_spill] sm:$0xff] %v6886_v17 }
  0x53   : > { %5532 = vmatprep.mubr.msk.f32.mxu1 %vm414_vm1, %v6690_v60 }
  0x54   : > { %5773 = vmatpush3.bf16.msra.mxu0 %v5772_v21  ;;  %v6894_v21 = vld [vmem:[#allocation2 + $0xe2] sm:$0xff] }
  0x55   : > { %6124 = vxpose.xlu0.b32.cont [7/16] (narrow) %v6123_v13, 8  ;;  %5775 = vmatprep.subr.bf16.mxu0 %v5774_v22  ;;  %v6878_v13 = vld [vmem:[#allocation2 + $0xb2] sm:$0xff]  ;;  %8166 = vst [vmem:[#allocation23_spill] sm:$0xff] %v6894_v21 }
  0x56   : > { %5533 = vmatmul.mubr.msk.f32.gmra.mrb[14].mxu1 %vm414_vm1, %v6692_v61  ;;  %8162 = vst [vmem:[#allocation19_spill] sm:$0xff] %v6878_v13  ;;  %v6896_v22 = vld [vmem:[#allocation2 + $0xf2] sm:$0xff] }
  0x57   : > { %5535 = vmatprep.mubr.msk.f32.mxu1 %vm414_vm1, %v6712_v5  ;;  %8167 = vst [vmem:[#allocation24_spill] sm:$0xff] %v6896_v22 }
  0x58   : > { %5777 = vmatpush3.bf16.msra.mxu0 %v5776_v26  ;;  %v6904_v26 = vld [vmem:[#allocation2 + $0x10a] sm:$0xff] }
  0x59   : > { %6126 = vxpose.xlu0.b32.cont [8/16] (narrow) %v6125_v18, 8  ;;  %5779 = vmatprep.subr.bf16.mxu0 %v5778_v33  ;;  %v6888_v18 = vld [vmem:[#allocation2 + $0xda] sm:$0xff]  ;;  %8169 = vst [vmem:[#allocation26_spill] sm:$0xff] %v6904_v26  ;;  %v6910_v33 = vld [vmem:[#allocation2 + $0x112] sm:$0xff] }
  0x5a   : > { %5536 = vmatmul.mubr.msk.f32.gmra.mrb[16].mxu1 %vm414_vm1, %v6714_v6  ;;  %8165 = vst [vmem:[#allocation22_spill] sm:$0xff] %v6888_v18  ;;  %8170 = vst [vmem:[#allocation27_spill] sm:$0xff] %v6910_v33 }
  0x5b   : > { %5538 = vmatprep.mubr.msk.f32.mxu1 %vm414_vm1, %v6726_v9 }
  0x5c   : > { %5781 = vmatpush3.bf16.msra.mxu0 %v5780_v41  ;;  %v6918_v41 = vld [vmem:[#allocation2 + $0x12a] sm:$0xff] }
  0x5d   : > { %6128 = vxpose.xlu0.b32.cont [9/16] (narrow) %v6127_v23, 8  ;;  %5300 = vmatprep.subr.msk.mxu0 %vm889_vm0, %v6789_v46  ;;  %v6902_v23 = vld [vmem:[#allocation2 + $0xfa] sm:$0xff]  ;;  %8172 = vst [vmem:[#allocation29_spill] sm:$0xff] %v6918_v41 }
  0x5e   : > { %5539 = vmatmul.mubr.msk.f32.gmra.mrb[18].mxu1 %vm414_vm1, %v6728_v10  ;;  %8168 = vst [vmem:[#allocation25_spill] sm:$0xff] %v6902_v23 }
  0x5f   : > { %5541 = vmatprep.mubr.msk.f32.mxu1 %vm414_vm1, %v6740_v14 }
  0x61   : > { %6130 = vxpose.xlu0.b32.cont [10/16] (narrow) %v6129_v37, 8  ;;  %v6912_v37 = vld [vmem:[#allocation2 + $0x122] sm:$0xff] }
  0x62   : > { %5542 = vmatmul.mubr.msk.f32.gmra.mrb[20].mxu1 %vm414_vm1, %v6742_v15  ;;  %8171 = vst [vmem:[#allocation28_spill] sm:$0xff] %v6912_v37 }
  0x63   : > { %5544 = vmatprep.mubr.msk.f32.mxu1 %vm414_vm1, %v6754_v19 }
  0x65   : > { %6132 = vxpose.xlu0.b32.cont [11/16] (narrow) %v6131_v47, 8  ;;  %v6920_v47 = vld [vmem:[#allocation2 + $0x13a] sm:$0xff] }
  0x66   : > { %5545 = vmatmul.mubr.msk.f32.gmra.mrb[22].mxu1 %vm414_vm1, %v6756_v20  ;;  %8173 = vst [vmem:[#allocation30_spill] sm:$0xff] %v6920_v47 }
  0x67   : > { %5547 = vmatprep.mubr.msk.f32.mxu1 %vm414_vm1, %v6768_v24 }
  0x69   : > { %6134 = vxpose.xlu0.b32.cont [12/16] (narrow) %v6133_v48, 8  ;;  %v6926_v48 = vld [vmem:[#allocation2 + $0x142] sm:$0xff] }
  0x6a   : > { %5548 = vmatmul.mubr.msk.f32.gmra.mrb[24].mxu1 %vm414_vm1, %v6770_v25  ;;  %8174 = vst [vmem:[#allocation31_spill] sm:$0xff] %v6926_v48 }
  0x6b   : > { %5552 = vmatprep.mubr.msk.f32.mxu1 %vm414_vm1, %v6809_v50  ;;  %v7010_v50 = vld [vmem:[#allocation2 + $0xb0] sm:$0xff] }
  0x6d   : > { %6136 = vxpose.xlu0.b32.cont [13/16] (narrow) %v6135_v49, 8  ;;  %v6928_v49 = vld [vmem:[#allocation2 + $0x152] sm:$0xff] }
  0x6e   : > { %5553 = vmatmul.mubr.msk.f32.vlgmr.msra.gmra.mrb[26].mxu1 %vm414_vm1, %v6815_v51  ;;  %8175 = vst [vmem:[#allocation32_spill] sm:$0xff] %v6928_v49 }
  0x6f   : > { %5555 = vmatprep.mubr.msk.f32.mxu1 %vm414_vm1, %v6819_v53  ;;  %5601 = vmatpush3.msk.msra.mxu1 %vm889_vm0, %v6618_v32  ;;  %v6141_v32 = vpack.i.bf16 %v6706_v1, %v6770_v25 }
  0x70   : > { %5650 = vmatprep.subr.msk.mxu1 %vm889_vm0, %v6824_v54 }
  0x71   : > { %6138 = vxpose.xlu0.b32.cont [14/16] (narrow) %v6137_v52, 8  ;;  %v6934_v52 = vld [vmem:[#allocation2 + $0x15a] sm:$0xff] }
  0x72   : > { %5556 = vmatmul.mubr.msk.f32.gmra.mrb[28].mxu1 %vm414_vm1, %v6830_v55  ;;  %8176 = vst [vmem:[#allocation33_spill] sm:$0xff] %v6934_v52 }
  0x73   : > { %5558 = vmatprep.mubr.msk.f32.mxu1 %vm414_vm1, %v6836_v58 }
  0x75   : > { %6140 = vxpose.xlu0.b32.cont [15/16] (narrow) %v6139_v56, 8  ;;  %v6936_v56 = vld [vmem:[#allocation2 + $0x16a] sm:$0xff] }
  0x76   : > { %5559 = vmatmul.mubr.msk.f32.gmra.mrb[30].mxu1 %vm414_vm1, %v6844_v62  ;;  %8177 = vst [vmem:[#allocation34_spill] sm:$0xff] %v6936_v56 }
  0x77   : > { %5561 = vmatprep.mubr.msk.f32.mxu1 %vm414_vm1, %v6848_v0 }
  0x79   : > { %6142 = vxpose.xlu0.b32.end [16/16] (narrow) %v6141_v32, 8  ;;  %v6942_v32 = vld [vmem:[#allocation2 + $0x172] sm:$0xff] }
  0x7a   : > { %5562 = vmatmul.mubr.msk.f32.gmra.mrb[0].mxu1 %vm414_vm1, %v6854_v4  ;;  %8178 = vst [vmem:[#allocation35_spill] sm:$0xff] %v6942_v32 }
  0x7b   : > { %5564 = vmatprep.mubr.msk.f32.mxu1 %vm414_vm1, %v6856_v2 }
  0x7e   : > { %5565 = vmatmul.mubr.msk.f32.gmra.mrb[2].mxu1 %vm414_vm1, %v6862_v7  ;;  %v7117_v7 = vld [vmem:[#allocation2 + $0x180] sm:$0xff] }
  0x7f   : > { %5567 = vmatprep.mubr.msk.f32.mxu1 %vm414_vm1, %v6864_v8  ;;  %v7093_v8 = vld [vmem:[#allocation2 + $0x150] sm:$0xff] }
  0x80   : > { %8181 = vst [vmem:[#allocation38_spill] sm:$0xff] %v7093_v8 }
  0x82   : > { %5568 = vmatmul.mubr.msk.f32.gmra.mrb[4].mxu1 %vm414_vm1, %v6870_v11  ;;  %v7081_v11 = vld [vmem:[#allocation2 + $0x138] sm:$0xff] }
  0x83   : > { %5570 = vmatprep.mubr.msk.f32.mxu1 %vm414_vm1, %v6872_v12  ;;  %v7077_v12 = vld [vmem:[#allocation2 + $0x128] sm:$0xff] }
  0x86   : > { %5571 = vmatmul.mubr.msk.f32.gmra.mrb[6].mxu1 %vm414_vm1, %v6878_v13  ;;  %v7069_v13 = vld [vmem:[#allocation2 + $0x120] sm:$0xff] }
  0x87   : > { %5573 = vmatprep.mubr.msk.f32.mxu1 %vm414_vm1, %v6880_v16  ;;  %v7012_v16 = vld [vmem:[#allocation2 + $0xc0] sm:$0xff] }
  0x8a   : > { %5574 = vmatmul.mubr.msk.f32.gmra.mrb[8].mxu1 %vm414_vm1, %v6886_v17  ;;  %v759_v17 = vld [vmem:[%s8154_s3] sm:$0xf] }
  0x8b   : > { %5576 = vmatprep.mubr.msk.f32.mxu1 %vm414_vm1, %v6888_v18  ;;  %v760_v18 = vld [vmem:[#allocation2 + $0x1] sm:$0xff] }
  0x8e   : > { %5577 = vmatmul.mubr.msk.f32.gmra.mrb[10].mxu1 %vm414_vm1, %v6894_v21 }
  0x8f   : > { %5579 = vmatprep.mubr.msk.f32.mxu1 %vm414_vm1, %v6896_v22  ;;  %v7001_v22 = vld [vmem:[#allocation2 + $0xa8] sm:$0xff] }
  0x92   : > { %5580 = vmatmul.mubr.msk.f32.gmra.mrb[12].mxu1 %vm414_vm1, %v6902_v23 }
  0x93   : > { %5582 = vmatprep.mubr.msk.f32.mxu1 %vm414_vm1, %v6904_v26  ;;  %v6999_v26 = vld [vmem:[#allocation2 + $0x98] sm:$0xff] }
  0x96   : > { %5583 = vmatmul.mubr.msk.f32.gmra.mrb[14].mxu1 %vm414_vm1, %v6910_v33  ;;  %v6993_v33 = vld [vmem:[#allocation2 + $0x90] sm:$0xff] }
  0x97   : > { %5585 = vmatprep.mubr.msk.f32.mxu1 %vm414_vm1, %v6912_v37  ;;  %v6985_v37 = vld [vmem:[#allocation2 + $0x78] sm:$0xff] }
  0x9a   : > { %5586 = vmatmul.mubr.msk.f32.gmra.mrb[16].mxu1 %vm414_vm1, %v6918_v41  ;;  %v6983_v41 = vld [vmem:[#allocation2 + $0x68] sm:$0xff] }
  0x9b   : > { %5588 = vmatprep.mubr.msk.f32.mxu1 %vm414_vm1, %v6920_v47  ;;  %v6944_v47 = vld [vmem:[#allocation2 + $0x182] sm:$0xff] }
  0x9c   : > { %8179 = vst [vmem:[#allocation36_spill] sm:$0xff] %v6944_v47 }
  0x9e   : > { %5589 = vmatmul.mubr.msk.f32.gmra.mrb[18].mxu1 %vm414_vm1, %v6926_v48  ;;  %v6952_v48 = vld [vmem:[#allocation2 + $0x30] sm:$0xff] }
  0x9f   : > { %5591 = vmatprep.mubr.msk.f32.mxu1 %vm414_vm1, %v6928_v49  ;;  %v6950_v49 = vld [vmem:[#allocation2 + $0x18a] sm:$0xff] }
  0xa0   : > { %8180 = vst [vmem:[#allocation37_spill] sm:$0xff] %v6950_v49 }
  0xa2   : > { %5592 = vmatmul.mubr.msk.f32.gmra.mrb[20].mxu1 %vm414_vm1, %v6934_v52  ;;  %v6960_v52 = vld [vmem:[#allocation2 + $0x48] sm:$0xff] }
  0xa3   : > { %5594 = vmatprep.mubr.msk.f32.mxu1 %vm414_vm1, %v6936_v56  ;;  %v6958_v56 = vld [vmem:[#allocation2 + $0x38] sm:$0xff] }
  0xa6   : > { %5595 = vmatmul.mubr.msk.f32.gmra.mrb[22].mxu1 %vm414_vm1, %v6942_v32  ;;  %v6965_v32 = vld [vmem:[%s8154_s3 + $0x20] sm:$0xf] }
  0xa7   : > { %5597 = vmatprep.mubr.msk.f32.mxu1 %vm414_vm1, %v6944_v47  ;;  %v6971_v47 = vld [vmem:[#allocation2 + $0x50] sm:$0xff] }
  0xaa   : > { %5598 = vmatmul.mubr.msk.f32.gmra.mrb[24].mxu1 %vm414_vm1, %v6950_v49  ;;  %v6975_v49 = vld [vmem:[#allocation2 + $0x60] sm:$0xff] }
  0xab   : > { %5602 = vmatprep.mubr.msk.f32.mxu1 %vm414_vm1, %v6952_v48 }
  0xae   : > { %5603 = vmatmul.mubr.msk.f32.vlgmr.msra.gmra.mrb[26].mxu1 %vm414_vm1, %v6958_v56 }
  0xaf   : > { %5605 = vmatprep.mubr.msk.f32.mxu1 %vm414_vm1, %v6960_v52  ;;  %5651 = vmatpush3.msk.msra.mxu1 %vm889_vm0, %v6824_v54  ;;  %v6991_v54 = vld [vmem:[#allocation2 + $0x80] sm:$0xff] }
  0xb0   : > { %5700 = vmatprep.subr.msk.mxu1 %vm889_vm0, %v6965_v32 }
  0xb2   : > { %5606 = vmatmul.mubr.msk.f32.gmra.mrb[28].mxu1 %vm414_vm1, %v6971_v47 }
  0xb3   : > { %5608 = vmatprep.mubr.msk.f32.mxu1 %vm414_vm1, %v6975_v49 }
  0xb6   : > { %5609 = vmatmul.mubr.msk.f32.gmra.mrb[30].mxu1 %vm414_vm1, %v6983_v41 }
  0xb7   : > { %5611 = vmatprep.mubr.msk.f32.mxu1 %vm414_vm1, %v6985_v37 }
  0xba   : > { %5612 = vmatmul.mubr.msk.f32.gmra.mrb[0].mxu1 %vm414_vm1, %v6991_v54 }
  0xbb   : > { %5614 = vmatprep.mubr.msk.f32.mxu1 %vm414_vm1, %v6993_v33 }
  0xbd   : > { %v6143_v23 = vpop.trf.xlu0 }
  0xbe   : > { %v6147_v21 = vunpack.i.h.bf16 %v6143_v23  ;;  %v6144_v51 = vunpack.i.l.bf16 %v6143_v23  ;;  %5615 = vmatmul.mubr.msk.f32.gmra.mrb[2].mxu1 %vm414_vm1, %v6999_v26  ;;  %v761_v23 = vld [vmem:[#allocation2 + $0x9] sm:$0xff] }
  0xbf   : > { %5617 = vmatprep.mubr.msk.f32.mxu1 %vm414_vm1, %v7001_v22 }
  0xc0   : > { %719 = vmatprep.mubr.f32.mxu0 %v6144_v51  ;;  %v7022_v51 = vld [vmem:[#allocation2 + $0xc8] sm:$0xff] }
  0xc1   : > { %720 = vmatmul.mubr.f32.vlgmr.msra.gmra.mrb[0].mxu0 %v6147_v21  ;;  %v7027_v21 = vld [vmem:[%s8154_s3 + $0x8] sm:$0xf] }
  0xc2   : > { %5301 = vmatpush3.msk.msra.mxu0 %vm889_vm0, %v6789_v46  ;;  %5302 = vmatprep.mubr.msk.f32.mxu0 %vm414_vm1, %v760_v18  ;;  %v7030_v46 = vld [vmem:[#allocation2 + $0xd8] sm:$0xff]  ;;  %v7041_v18 = vld [vmem:[#allocation2 + $0xe0] sm:$0xff] }
  0xc3   : > { %5350 = vmatprep.subr.msk.mxu0 %vm889_vm0, %v759_v17  ;;  %5618 = vmatmul.mubr.msk.f32.gmra.mrb[4].mxu1 %vm414_vm1, %v7010_v50 }
  0xc4   : > { %5620 = vmatprep.mubr.msk.f32.mxu1 %vm414_vm1, %v7012_v16 }
  0xc5   : > { %5303 = vmatmul.mubr.msk.f32.vlgmr.msra.gmra.mrb[2].mxu0 %vm414_vm1, %v761_v23  ;;  %v7045_v23 = vld [vmem:[#allocation2 + $0xf0] sm:$0xff] }
  0xc6   : > { %5351 = vmatpush3.msk.msra.mxu0 %vm889_vm0, %v759_v17  ;;  %5305 = vmatprep.mubr.msk.f32.mxu0 %vm414_vm1, %v6604_v29  ;;  %v7053_v29 = vld [vmem:[#allocation2 + $0xf8] sm:$0xff]  ;;  %v7057_v17 = vld [vmem:[#allocation2 + $0x108] sm:$0xff] }
  0xc7   : > { %5621 = vmatmul.mubr.msk.f32.gmra.mrb[6].mxu1 %vm414_vm1, %v7022_v51  ;;  %5400 = vmatprep.subr.msk.mxu0 %vm889_vm0, %v7027_v21 }
  0xc8   : > { %5623 = vmatprep.mubr.msk.f32.mxu1 %vm414_vm1, %v7030_v46 }
  0xc9   : > { %5306 = vmatmul.mubr.msk.f32.gmra.mrb[4].mxu0 %vm414_vm1, %v6624_v34  ;;  %v7065_v34 = vld [vmem:[#allocation2 + $0x110] sm:$0xff] }
  0xca   : > { %5308 = vmatprep.mubr.msk.f32.mxu0 %vm414_vm1, %v6640_v39 }
  0xcb   : > { %5624 = vmatmul.mubr.msk.f32.gmra.mrb[8].mxu1 %vm414_vm1, %v7041_v18 }
  0xcc   : > { %5626 = vmatprep.mubr.msk.f32.mxu1 %vm414_vm1, %v7045_v23 }
  0xcd   : > { %5309 = vmatmul.mubr.msk.f32.gmra.mrb[6].mxu0 %vm414_vm1, %v6654_v44 }
  0xce   : > { %5311 = vmatprep.mubr.msk.f32.mxu0 %vm414_vm1, %v6696_v63 }
  0xcf   : > { %5627 = vmatmul.mubr.msk.f32.gmra.mrb[10].mxu1 %vm414_vm1, %v7053_v29 }
  0xd0   : > { %5629 = vmatprep.mubr.msk.f32.mxu1 %vm414_vm1, %v7057_v17 }
  0xd1   : > { %5312 = vmatmul.mubr.msk.f32.gmra.mrb[8].mxu0 %vm414_vm1, %v6708_v3 }
  0xd2   : > { %5314 = vmatprep.mubr.msk.f32.mxu0 %vm414_vm1, %v6600_v27  ;;  %v7089_v27 = vld [vmem:[#allocation2 + $0x140] sm:$0xff] }
  0xd3   : > { %5630 = vmatmul.mubr.msk.f32.gmra.mrb[12].mxu1 %vm414_vm1, %v7065_v34 }
  0xd4   : > { %5632 = vmatprep.mubr.msk.f32.mxu1 %vm414_vm1, %v7069_v13 }
  0xd5   : > { %5315 = vmatmul.mubr.msk.f32.gmra.mrb[10].mxu0 %vm414_vm1, %v6602_v28  ;;  %v7101_v28 = vld [vmem:[#allocation2 + $0x158] sm:$0xff] }
  0xd6   : > { %5317 = vmatprep.mubr.msk.f32.mxu0 %vm414_vm1, %v6613_v31  ;;  %8182 = vst [vmem:[#allocation39_spill] sm:$0xff] %v7101_v28  ;;  %v7105_v31 = vld [vmem:[#allocation2 + $0x168] sm:$0xff] }
  0xd7   : > { %5633 = vmatmul.mubr.msk.f32.gmra.mrb[14].mxu1 %vm414_vm1, %v7077_v12  ;;  %8183 = vst [vmem:[#allocation40_spill] sm:$0xff] %v7105_v31 }
  0xd8   : > { %5635 = vmatprep.mubr.msk.f32.mxu1 %vm414_vm1, %v7081_v11 }
  0xd9   : > { %5318 = vmatmul.mubr.msk.f32.gmra.mrb[12].mxu0 %vm414_vm1, %v6630_v36  ;;  %v7113_v36 = vld [vmem:[#allocation2 + $0x170] sm:$0xff] }
  0xda   : > { %5320 = vmatprep.mubr.msk.f32.mxu0 %vm414_vm1, %v6636_v38 }
  0xdb   : > { %5636 = vmatmul.mubr.msk.f32.gmra.mrb[16].mxu1 %vm414_vm1, %v7089_v27 }
  0xdc   : > { %5638 = vmatprep.mubr.msk.f32.mxu1 %vm414_vm1, %v7093_v8  ;;  %v3030_v8 = vld [vmem:[#allocation2 + $0x1a0] sm:$0xff] }
  0xdd   : > { %5321 = vmatmul.mubr.msk.f32.gmra.mrb[14].mxu0 %vm414_vm1, %v6648_v42 }
  0xde   : > { %5323 = vmatprep.mubr.msk.f32.mxu0 %vm414_vm1, %v6652_v43 }
  0xdf   : > { %5639 = vmatmul.mubr.msk.f32.gmra.mrb[18].mxu1 %vm414_vm1, %v7101_v28  ;;  %v7125_v28 = vld [vmem:[#allocation2 + $0x188] sm:$0xff] }
  0xe0   : > { %5641 = vmatprep.mubr.msk.f32.mxu1 %vm414_vm1, %v7105_v31  ;;  %v3029_v31 = vld [vmem:[#allocation2 + $0x198] sm:$0xff] }
  0xe1   : > { %5324 = vmatmul.mubr.msk.f32.gmra.mrb[16].mxu0 %vm414_vm1, %v6682_v57 }
  0xe2   : > { %5326 = vmatprep.mubr.msk.f32.mxu0 %vm414_vm1, %v6688_v59 }
  0xe3   : > { %5642 = vmatmul.mubr.msk.f32.gmra.mrb[20].mxu1 %vm414_vm1, %v7113_v36 }
  0xe4   : > { %5644 = vmatprep.mubr.msk.f32.mxu1 %vm414_vm1, %v7117_v7 }
  0xe5   : > { %5327 = vmatmul.mubr.msk.f32.gmra.mrb[18].mxu0 %vm414_vm1, %v6706_v1 }
  0xe6   : > { %5329 = vmatprep.mubr.msk.f32.mxu0 %vm414_vm1, %v6611_v30  ;;  %v3392_v30 = vld [vmem:[#allocation2 + $0x61] sm:$0xff] }
  0xe7   : > { %5645 = vmatmul.mubr.msk.f32.gmra.mrb[22].mxu1 %vm414_vm1, %v7125_v28 }
  0xe8   : > { %5647 = vmatprep.mubr.msk.f32.mxu1 %vm414_vm1, %v3029_v31  ;;  %v8193_v31 = vld [vmem:[#allocation13_spill] sm:$0xff] }
  0xe9   : > { %5330 = vmatmul.mubr.msk.f32.gmra.mrb[20].mxu0 %vm414_vm1, %v6626_v35  ;;  %v3393_v35 = vld [vmem:[#allocation2 + $0x69] sm:$0xff] }
  0xea   : > { %5332 = vmatprep.mubr.msk.f32.mxu0 %vm414_vm1, %v6642_v40  ;;  %v3395_v40 = vld [vmem:[#allocation2 + $0x81] sm:$0xff] }
  0xeb   : > { %5648 = vmatmul.mubr.msk.f32.gmra.mrb[24].mxu1 %vm414_vm1, %v3030_v8  ;;  %v3404_v8 = vld [vmem:[#allocation2 + $0xf1] sm:$0xff] }
  0xec   : > { %5652 = vmatprep.mubr.msk.f32.mxu1 %vm414_vm1, %v6640_v39  ;;  %v3394_v39 = vld [vmem:[#allocation2 + $0x79] sm:$0xff] }
  0xed   : > { %5333 = vmatmul.mubr.msk.f32.gmra.mrb[22].mxu0 %vm414_vm1, %v6656_v45  ;;  %v728_v45 = vld [vmem:[#allocation2 + $0x8] sm:$0xff] }
  0xee   : > { %5335 = vmatprep.mubr.msk.f32.mxu0 %vm414_vm1, %v6690_v60 }
  0xef   : > { %5653 = vmatmul.mubr.msk.f32.vlgmr.msra.gmra.mrb[26].mxu1 %vm414_vm1, %v6654_v44  ;;  %v727_v44 = vld [vmem:[#allocation2] sm:$0xff] }
  0xf0   : > { %5655 = vmatprep.mubr.msk.f32.mxu1 %vm414_vm1, %v6696_v63  ;;  %5701 = vmatpush3.msk.msra.mxu1 %vm889_vm0, %v6965_v32  ;;  %v3405_v32 = vld [vmem:[#allocation2 + $0xf9] sm:$0xff] }
  0xf1   : > { %5336 = vmatmul.mubr.msk.f32.gmra.mrb[24].mxu0 %vm414_vm1, %v6692_v61 }
  0xf2   : > { %5338 = vmatprep.mubr.msk.f32.mxu0 %vm414_vm1, %v6712_v5 }
  0xf3   : > { %5656 = vmatmul.mubr.msk.f32.gmra.mrb[28].mxu1 %vm414_vm1, %v6708_v3 }
  0xf4   : > { %5658 = vmatprep.mubr.msk.f32.mxu1 %vm414_vm1, %v3392_v30  ;;  %v8194_v30 = vld [vmem:[#allocation21_spill] sm:$0xff] }
  0xf5   : > { %5339 = vmatmul.mubr.msk.f32.gmra.mrb[26].mxu0 %vm414_vm1, %v6714_v6 }
  0xf6   : > { %5341 = vmatprep.mubr.msk.f32.mxu0 %vm414_vm1, %v6726_v9 }
  0xf7   : > { %5659 = vmatmul.mubr.msk.f32.gmra.mrb[30].mxu1 %vm414_vm1, %v3393_v35  ;;  %v6148_v35 = vld [vmem:[%s8154_s3 + $0x10] sm:$0xf] }
  0xf8   : > { %5661 = vmatprep.mubr.msk.f32.mxu1 %vm414_vm1, %v3394_v39  ;;  %v8195_v39 = vld [vmem:[#allocation22_spill] sm:$0xff] }
  0xf9   : > { %5342 = vmatmul.mubr.msk.f32.gmra.mrb[28].mxu0 %vm414_vm1, %v6728_v10 }
  0xfa   : > { %5344 = vmatprep.mubr.msk.f32.mxu0 %vm414_vm1, %v6740_v14 }
  0xfb   : > { %5662 = vmatmul.mubr.msk.f32.gmra.mrb[0].mxu1 %vm414_vm1, %v3395_v40  ;;  %v8196_v40 = vld [vmem:[#allocation14_spill] sm:$0xff] }
  0xfc   : > { %5664 = vmatprep.mubr.msk.f32.mxu1 %vm414_vm1, %v6636_v38  ;;  %v7184_v38 = vld [vmem:[#allocation2 + $0x18] sm:$0xff] }
  0xfd   : > { %5345 = vmatmul.mubr.msk.f32.gmra.mrb[30].mxu0 %vm414_vm1, %v6742_v15 }
  0xfe   : > { %5347 = vmatprep.mubr.msk.f32.mxu0 %vm414_vm1, %v6754_v19 }
  0xff   : > { %5665 = vmatmul.mubr.msk.f32.gmra.mrb[2].mxu1 %vm414_vm1, %v6648_v42  ;;  %v7191_v42 = vld [vmem:[%s8154_s3 + $0xc] sm:$0xf] }
 0x100   : > { %5667 = vmatprep.mubr.msk.f32.mxu1 %vm414_vm1, %v6652_v43  ;;  %v3402_v43 = vld [vmem:[#allocation2 + $0xd9] sm:$0xff] }
 0x101   : > { %5348 = vmatmul.mubr.msk.f32.gmra.mrb[32].mxu0 %vm414_vm1, %v6756_v20 }
 0x102   : > { %5352 = vmatprep.mubr.msk.f32.mxu0 %vm414_vm1, %v727_v44  ;;  %v8197_v44 = vld [vmem:[#allocation23_spill] sm:$0xff] }
 0x103   : > { %5668 = vmatmul.mubr.msk.f32.gmra.mrb[4].mxu1 %vm414_vm1, %v6682_v57  ;;  %v7198_v57 = vld [vmem:[#allocation2 + $0x20] sm:$0xff] }
 0x104   : > { %5670 = vmatprep.mubr.msk.f32.mxu1 %vm414_vm1, %v6688_v59  ;;  %v3403_v59 = vld [vmem:[#allocation2 + $0xe1] sm:$0xff] }
 0x105   : > { %5353 = vmatmul.mubr.msk.f32.vlgmr.msra.gmra.mrb[2].mxu0 %vm414_vm1, %v728_v45  ;;  %v8198_v45 = vld [vmem:[#allocation24_spill] sm:$0xff] }
 0x106   : > { %5401 = vmatpush3.msk.msra.mxu0 %vm889_vm0, %v7027_v21  ;;  %5355 = vmatprep.mubr.msk.f32.mxu0 %vm414_vm1, %v7184_v38  ;;  %v8192_v21 = vld [vmem:[#allocation20_spill] sm:$0xff] }
 0x107   : > { %5671 = vmatmul.mubr.msk.f32.gmra.mrb[6].mxu1 %vm414_vm1, %v6706_v1  ;;  %5450 = vmatprep.subr.msk.mxu0 %vm889_vm0, %v7191_v42 }
 0x108   : > { %5673 = vmatprep.mubr.msk.f32.mxu1 %vm414_vm1, %v3402_v43  ;;  %v8200_v43 = vld [vmem:[#allocation26_spill] sm:$0xff] }
 0x109   : > { %5356 = vmatmul.mubr.msk.f32.gmra.mrb[4].mxu0 %vm414_vm1, %v7198_v57 }
 0x10a   : > { %5358 = vmatprep.mubr.msk.f32.mxu0 %vm414_vm1, %v6952_v48 }
 0x10b   : > { %5674 = vmatmul.mubr.msk.f32.gmra.mrb[8].mxu1 %vm414_vm1, %v3403_v59  ;;  %v8202_v59 = vld [vmem:[#allocation28_spill] sm:$0xff] }
 0x10c   : > { %5676 = vmatprep.mubr.msk.f32.mxu1 %vm414_vm1, %v3404_v8  ;;  %v8209_v8 = vld [vmem:[#allocation35_spill] sm:$0xff] }
 0x10d   : > { %5359 = vmatmul.mubr.msk.f32.gmra.mrb[6].mxu0 %vm414_vm1, %v6958_v56 }
 0x10e   : > { %5361 = vmatprep.mubr.msk.f32.mxu0 %vm414_vm1, %v6960_v52 }
 0x10f   : > { %5677 = vmatmul.mubr.msk.f32.gmra.mrb[10].mxu1 %vm414_vm1, %v3405_v32  ;;  %v8210_v32 = vld [vmem:[#allocation36_spill] sm:$0xff] }
 0x110   : > { %5679 = vmatprep.mubr.msk.f32.mxu1 %vm414_vm1, %v6690_v60  ;;  %v3418_v60 = vld [vmem:[#allocation2 + $0x199] sm:$0xff] }
 0x111   : > { %5362 = vmatmul.mubr.msk.f32.gmra.mrb[8].mxu0 %vm414_vm1, %v6971_v47 }
 0x112   : > { %5364 = vmatprep.mubr.msk.f32.mxu0 %vm414_vm1, %v6975_v49 }
 0x113   : > { %5680 = vmatmul.mubr.msk.f32.gmra.mrb[12].mxu1 %vm414_vm1, %v6692_v61  ;;  %v3419_v61 = vld [vmem:[#allocation2 + $0x1a1] sm:$0xff] }
 0x114   : > { %5682 = vmatprep.mubr.msk.f32.mxu1 %vm414_vm1, %v6712_v5  ;;  %v8184_v5 = vld [vmem:[#allocation38_spill] sm:$0xff] }
 0x115   : > { %5365 = vmatmul.mubr.msk.f32.gmra.mrb[10].mxu0 %vm414_vm1, %v6983_v41 }
 0x116   : > { %5367 = vmatprep.mubr.msk.f32.mxu0 %vm414_vm1, %v6985_v37 }
 0x117   : > { %5683 = vmatmul.mubr.msk.f32.gmra.mrb[14].mxu1 %vm414_vm1, %v6714_v6  ;;  %v8185_v6 = vld [vmem:[#allocation15_spill] sm:$0xff] }
 0x118   : > { %5685 = vmatprep.mubr.msk.f32.mxu1 %vm414_vm1, %v6726_v9  ;;  %v8186_v9 = vld [vmem:[#allocation16_spill] sm:$0xff] }
 0x119   : > { %5368 = vmatmul.mubr.msk.f32.gmra.mrb[12].mxu0 %vm414_vm1, %v6991_v54 }
 0x11a   : > { %5370 = vmatprep.mubr.msk.f32.mxu0 %vm414_vm1, %v6993_v33 }
 0x11b   : > { %5686 = vmatmul.mubr.msk.f32.gmra.mrb[16].mxu1 %vm414_vm1, %v6728_v10  ;;  %v8187_v10 = vld [vmem:[#allocation39_spill] sm:$0xff] }
 0x11c   : > { %5688 = vmatprep.mubr.msk.f32.mxu1 %vm414_vm1, %v6740_v14  ;;  %v8188_v14 = vld [vmem:[#allocation40_spill] sm:$0xff] }
 0x11d   : > { %5371 = vmatmul.mubr.msk.f32.gmra.mrb[14].mxu0 %vm414_vm1, %v6999_v26 }
 0x11e   : > { %5373 = vmatprep.mubr.msk.f32.mxu0 %vm414_vm1, %v7001_v22 }
 0x11f   : > { %5689 = vmatmul.mubr.msk.f32.gmra.mrb[18].mxu1 %vm414_vm1, %v6742_v15  ;;  %v8189_v15 = vld [vmem:[#allocation17_spill] sm:$0xff] }
 0x120   : > { %5691 = vmatprep.mubr.msk.f32.mxu1 %vm414_vm1, %v6754_v19  ;;  %v1442_v19 = vld [vmem:[#allocation2 + $0x2] sm:$0xff] }
 0x121   : > { %5374 = vmatmul.mubr.msk.f32.gmra.mrb[16].mxu0 %vm414_vm1, %v7010_v50 }
 0x122   : > { %5376 = vmatprep.mubr.msk.f32.mxu0 %vm414_vm1, %v7012_v16 }
 0x123   : > { %5692 = vmatmul.mubr.msk.f32.gmra.mrb[20].mxu1 %vm414_vm1, %v6756_v20  ;;  %v8190_v20 = vld [vmem:[#allocation18_spill] sm:$0xff] }
 0x124   : > { %5694 = vmatprep.mubr.msk.f32.mxu1 %vm414_vm1, %v6768_v24  ;;  %v1443_v24 = vld [vmem:[#allocation2 + $0xa] sm:$0xff] }
 0x125   : > { %5377 = vmatmul.mubr.msk.f32.gmra.mrb[18].mxu0 %vm414_vm1, %v7022_v51 }
 0x126   : > { %5379 = vmatprep.mubr.msk.f32.mxu0 %vm414_vm1, %v7030_v46 }
 0x127   : > { %5695 = vmatmul.mubr.msk.f32.gmra.mrb[22].mxu1 %vm414_vm1, %v6770_v25  ;;  %v8191_v25 = vld [vmem:[#allocation19_spill] sm:$0xff] }
 0x128   : > { %5697 = vmatprep.mubr.msk.f32.mxu1 %vm414_vm1, %v3418_v60  ;;  %v3807_v60 = vld [vmem:[#allocation2 + $0x19a] sm:$0xff] }
 0x129   : > { %5380 = vmatmul.mubr.msk.f32.gmra.mrb[20].mxu0 %vm414_vm1, %v7041_v18 }
 0x12a   : > { %5382 = vmatprep.mubr.msk.f32.mxu0 %vm414_vm1, %v7045_v23 }
 0x12b   : > { %5698 = vmatmul.mubr.msk.f32.gmra.mrb[24].mxu1 %vm414_vm1, %v3419_v61  ;;  %v8211_v61 = vld [vmem:[#allocation37_spill] sm:$0xff] }
 0x12c   : > { %5702 = vmatprep.mubr.msk.f32.mxu1 %vm414_vm1, %v6819_v53 }
 0x12d   : > { %5383 = vmatmul.mubr.msk.f32.gmra.mrb[22].mxu0 %vm414_vm1, %v7053_v29 }
 0x12e   : > { %5385 = vmatprep.mubr.msk.f32.mxu0 %vm414_vm1, %v7057_v17 }
 0x12f   : > { %5703 = vmatmul.mubr.msk.f32.vlgmr.msra.gmra.mrb[26].mxu1 %vm414_vm1, %v6830_v55 }
 0x130   : > { %5705 = vmatprep.mubr.msk.f32.mxu1 %vm414_vm1, %v6836_v58 }
 0x131   : > { %5386 = vmatmul.mubr.msk.f32.gmra.mrb[24].mxu0 %vm414_vm1, %v7065_v34 }
 0x132   : > { %5388 = vmatprep.mubr.msk.f32.mxu0 %vm414_vm1, %v7069_v13 }
 0x133   : > { %5706 = vmatmul.mubr.msk.f32.gmra.mrb[28].mxu1 %vm414_vm1, %v6844_v62 }
 0x134   : > { %5708 = vmatprep.mubr.msk.f32.mxu1 %vm414_vm1, %v6848_v0 }
 0x135   : > { %5389 = vmatmul.mubr.msk.f32.gmra.mrb[26].mxu0 %vm414_vm1, %v7077_v12 }
 0x136   : > { %5391 = vmatprep.mubr.msk.f32.mxu0 %vm414_vm1, %v7081_v11 }
 0x137   : > { %5709 = vmatmul.mubr.msk.f32.gmra.mrb[30].mxu1 %vm414_vm1, %v6854_v4 }
 0x138   : > { %5711 = vmatprep.mubr.msk.f32.mxu1 %vm414_vm1, %v6856_v2 }
 0x139   : > { %5392 = vmatmul.mubr.msk.f32.gmra.mrb[28].mxu0 %vm414_vm1, %v7089_v27 }
 0x13a   : > { %5394 = vmatprep.mubr.msk.f32.mxu0 %vm414_vm1, %v8184_v5 }
 0x13b   : > { %5712 = vmatmul.mubr.msk.f32.gmra.mrb[0].mxu1 %vm414_vm1, %v8185_v6 }
 0x13c   : > { %5714 = vmatprep.mubr.msk.f32.mxu1 %vm414_vm1, %v8186_v9 }
 0x13d   : > { %5395 = vmatmul.mubr.msk.f32.gmra.mrb[30].mxu0 %vm414_vm1, %v8187_v10 }
 0x13e   : > { %5397 = vmatprep.mubr.msk.f32.mxu0 %vm414_vm1, %v8188_v14 }
 0x13f   : > { %5715 = vmatmul.mubr.msk.f32.gmra.mrb[2].mxu1 %vm414_vm1, %v8189_v15 }
 0x140   : > { %5717 = vmatprep.mubr.msk.f32.mxu1 %vm414_vm1, %v8190_v20 }
 0x141   : > { %5398 = vmatmul.mubr.msk.f32.gmra.mrb[32].mxu0 %vm414_vm1, %v7113_v36 }
 0x142   : > { %5402 = vmatprep.mubr.msk.f32.mxu0 %vm414_vm1, %v1442_v19 }
 0x143   : > { %5718 = vmatmul.mubr.msk.f32.gmra.mrb[4].mxu1 %vm414_vm1, %v8191_v25 }
 0x144   : > { %5720 = vmatprep.mubr.msk.f32.mxu1 %vm414_vm1, %v8192_v21 }
 0x145   : > { %5403 = vmatmul.mubr.msk.f32.vlgmr.msra.gmra.mrb[2].mxu0 %vm414_vm1, %v1443_v24 }
 0x146   : > { %5451 = vmatpush3.msk.msra.mxu0 %vm889_vm0, %v7191_v42  ;;  %5405 = vmatprep.mubr.msk.f32.mxu0 %vm414_vm1, %v8193_v31  ;;  %v8199_v42 = vld [vmem:[#allocation25_spill] sm:$0xff] }
 0x147   : > { %5721 = vmatmul.mubr.msk.f32.gmra.mrb[6].mxu1 %vm414_vm1, %v8194_v30  ;;  %5500 = vmatprep.subr.msk.mxu0 %vm889_vm0, %v6148_v35 }
 0x148   : > { %5723 = vmatprep.mubr.msk.f32.mxu1 %vm414_vm1, %v8195_v39 }
 0x149   : > { %5406 = vmatmul.mubr.msk.f32.gmra.mrb[4].mxu0 %vm414_vm1, %v8196_v40 }
 0x14a   : > { %5408 = vmatprep.mubr.msk.f32.mxu0 %vm414_vm1, %v6819_v53  ;;  %v8201_v53 = vld [vmem:[#allocation27_spill] sm:$0xff] }
 0x14b   : > { %5724 = vmatmul.mubr.msk.f32.gmra.mrb[8].mxu1 %vm414_vm1, %v8197_v44 }
 0x14c   : > { %5726 = vmatprep.mubr.msk.f32.mxu1 %vm414_vm1, %v8198_v45 }
 0x14d   : > { %5409 = vmatmul.mubr.msk.f32.gmra.mrb[6].mxu0 %vm414_vm1, %v6830_v55  ;;  %v8203_v55 = vld [vmem:[#allocation29_spill] sm:$0xff] }
 0x14e   : > { %5411 = vmatprep.mubr.msk.f32.mxu0 %vm414_vm1, %v6836_v58  ;;  %v8204_v58 = vld [vmem:[#allocation30_spill] sm:$0xff] }
 0x14f   : > { %5727 = vmatmul.mubr.msk.f32.gmra.mrb[10].mxu1 %vm414_vm1, %v8199_v42 }
 0x150   : > { %5729 = vmatprep.mubr.msk.f32.mxu1 %vm414_vm1, %v8200_v43 }
 0x151   : > { %5412 = vmatmul.mubr.msk.f32.gmra.mrb[8].mxu0 %vm414_vm1, %v6844_v62  ;;  %v8205_v62 = vld [vmem:[#allocation31_spill] sm:$0xff] }
 0x152   : > { %5414 = vmatprep.mubr.msk.f32.mxu0 %vm414_vm1, %v6848_v0  ;;  %v8206_v0 = vld [vmem:[#allocation32_spill] sm:$0xff] }
 0x153   : > { %5730 = vmatmul.mubr.msk.f32.gmra.mrb[12].mxu1 %vm414_vm1, %v8201_v53 }
 0x154   : > { %5732 = vmatprep.mubr.msk.f32.mxu1 %vm414_vm1, %v8202_v59 }
 0x155   : > { %5415 = vmatmul.mubr.msk.f32.gmra.mrb[10].mxu0 %vm414_vm1, %v6854_v4  ;;  %v8207_v4 = vld [vmem:[#allocation33_spill] sm:$0xff] }
 0x156   : > { %5417 = vmatprep.mubr.msk.f32.mxu0 %vm414_vm1, %v6856_v2  ;;  %v8208_v2 = vld [vmem:[#allocation34_spill] sm:$0xff] }
 0x157   : > { %5733 = vmatmul.mubr.msk.f32.gmra.mrb[14].mxu1 %vm414_vm1, %v8203_v55 }
 0x158   : > { %5735 = vmatprep.mubr.msk.f32.mxu1 %vm414_vm1, %v8204_v58 }
 0x159   : > { %5418 = vmatmul.mubr.msk.f32.gmra.mrb[12].mxu0 %vm414_vm1, %v8185_v6  ;;  %v3808_v6 = vld [vmem:[#allocation2 + $0x1a2] sm:$0xff] }
 0x15a   : > { %5420 = vmatprep.mubr.msk.f32.mxu0 %vm414_vm1, %v8186_v9  ;;  %v6155_v9 = vld [vmem:[#allocation2 + $0x79] sm:$0xff] }
 0x15b   : > { %5736 = vmatmul.mubr.msk.f32.gmra.mrb[16].mxu1 %vm414_vm1, %v8205_v62 }
 0x15c   : > { %5738 = vmatprep.mubr.msk.f32.mxu1 %vm414_vm1, %v8206_v0 }
 0x15d   : > { %5421 = vmatmul.mubr.msk.f32.gmra.mrb[14].mxu0 %vm414_vm1, %v8189_v15  ;;  %v6156_v15 = vld [vmem:[#allocation2 + $0x81] sm:$0xff] }
 0x15e   : > { %5423 = vmatprep.mubr.msk.f32.mxu0 %vm414_vm1, %v8190_v20  ;;  %v6157_v20 = vld [vmem:[#allocation2 + $0x91] sm:$0xff] }
 0x15f   : > { %5739 = vmatmul.mubr.msk.f32.gmra.mrb[18].mxu1 %vm414_vm1, %v8207_v4 }
 0x160   : > { %5741 = vmatprep.mubr.msk.f32.mxu1 %vm414_vm1, %v8208_v2 }
 0x161   : > { %5424 = vmatmul.mubr.msk.f32.gmra.mrb[16].mxu0 %vm414_vm1, %v8191_v25  ;;  %v6158_v25 = vld [vmem:[#allocation2 + $0x99] sm:$0xff] }
 0x162   : > { %5426 = vmatprep.mubr.msk.f32.mxu0 %vm414_vm1, %v8192_v21  ;;  %v542_v21 = vsel %vm414_vm1, %v6158_v25, 0.0  ;;  %v6170_v25 = vld [vmem:[#allocation2 + $0x139] sm:$0xff] }
 0x163   : > { %5742 = vmatmul.mubr.msk.f32.gmra.mrb[20].mxu1 %vm414_vm1, %v8209_v8 }
 0x164   : > { %5744 = vmatprep.mubr.msk.f32.mxu1 %vm414_vm1, %v8210_v32  ;;  %v550_v32 = vsel %vm414_vm1, %v6706_v1, 0.0 }
 0x165   : > { %5427 = vmatmul.mubr.msk.f32.gmra.mrb[18].mxu0 %vm414_vm1, %v8194_v30 }
 0x166   : > { %5429 = vmatprep.mubr.msk.f32.mxu0 %vm414_vm1, %v8195_v39  ;;  %v6159_v39 = vld [vmem:[#allocation2 + $0xa9] sm:$0xff] }
 0x167   : > { %5745 = vmatmul.mubr.msk.f32.gmra.mrb[22].mxu1 %vm414_vm1, %v8211_v61  ;;  %v544_v40 = vsel %vm414_vm1, %v6159_v39, 0.0 }
 0x168   : > { %5747 = vmatprep.mubr.msk.f32.mxu1 %vm414_vm1, %v3807_v60 }
 0x169   : > { %5430 = vmatmul.mubr.msk.f32.gmra.mrb[20].mxu0 %vm414_vm1, %v8197_v44 }
 0x16a   : > { %5432 = vmatprep.mubr.msk.f32.mxu0 %vm414_vm1, %v8198_v45 }
 0x16b   : > { %5748 = vmatmul.mubr.msk.f32.gmra.mrb[24].mxu1 %vm414_vm1, %v3808_v6 }
 0x16d   : > { %5433 = vmatmul.mubr.msk.f32.gmra.mrb[22].mxu0 %vm414_vm1, %v8199_v42 }
 0x16e   : > { %5435 = vmatprep.mubr.msk.f32.mxu0 %vm414_vm1, %v8200_v43  ;;  %v6160_v43 = vld [vmem:[#allocation2 + $0xb1] sm:$0xff] }
 0x171   : > { %5436 = vmatmul.mubr.msk.f32.gmra.mrb[24].mxu0 %vm414_vm1, %v8201_v53  ;;  %v546_v53 = vsel %vm414_vm1, %v6160_v43, 0.0 }
 0x172   : > { %5438 = vmatprep.mubr.msk.f32.mxu0 %vm414_vm1, %v8202_v59 }
 0x175   : > { %5439 = vmatmul.mubr.msk.f32.gmra.mrb[26].mxu0 %vm414_vm1, %v8203_v55 }
 0x176   : > { %5441 = vmatprep.mubr.msk.f32.mxu0 %vm414_vm1, %v8204_v58 }
 0x179   : > { %5442 = vmatmul.mubr.msk.f32.gmra.mrb[28].mxu0 %vm414_vm1, %v8205_v62  ;;  %v6161_v62 = vld [vmem:[#allocation2 + $0xc1] sm:$0xff] }
 0x17a   : > { %5444 = vmatprep.mubr.msk.f32.mxu0 %vm414_vm1, %v8206_v0  ;;  %v548_v0 = vsel %vm414_vm1, %v6161_v62, 0.0 }
 0x17d   : > { %5445 = vmatmul.mubr.msk.f32.gmra.mrb[30].mxu0 %vm414_vm1, %v8207_v4 }
 0x17e   : > { %5447 = vmatprep.mubr.msk.f32.mxu0 %vm414_vm1, %v8208_v2 }
 0x181   : > { %5448 = vmatmul.mubr.msk.f32.gmra.mrb[32].mxu0 %vm414_vm1, %v8209_v8 }
 0x182   : > { %5452 = vmatprep.mubr.msk.f32.mxu0 %vm414_vm1, %v7184_v38  ;;  %v6154_v38 = vld [vmem:[#allocation2 + $0x69] sm:$0xff] }
 0x185   : > { %5453 = vmatmul.mubr.msk.f32.vlgmr.msra.gmra.mrb[2].mxu0 %vm414_vm1, %v7198_v57  ;;  %v534_v57 = vsel %vm414_vm1, %v6154_v38, 0.0 }
 0x186   : > { %5501 = vmatpush3.msk.msra.mxu0 %vm889_vm0, %v6148_v35  ;;  %5455 = vmatprep.mubr.msk.f32.mxu0 %vm414_vm1, %v6952_v48 }
 0x189   : > { %5456 = vmatmul.mubr.msk.f32.gmra.mrb[4].mxu0 %vm414_vm1, %v6958_v56 }
 0x18a   : > { %5458 = vmatprep.mubr.msk.f32.mxu0 %vm414_vm1, %v6960_v52 }
 0x18d   : > { %5459 = vmatmul.mubr.msk.f32.gmra.mrb[6].mxu0 %vm414_vm1, %v6971_v47 }
 0x18e   : > { %5461 = vmatprep.mubr.msk.f32.mxu0 %vm414_vm1, %v6975_v49  ;;  %v6151_v49 = vld [vmem:[#allocation2 + $0x31] sm:$0xff] }
 0x18f   : > { %v524_v52 = vsel %vm414_vm1, %v6151_v49, 0.0  ;;  %v6165_v49 = vld [vmem:[#allocation2 + $0xf9] sm:$0xff] }
 0x191   : > { %5462 = vmatmul.mubr.msk.f32.gmra.mrb[8].mxu0 %vm414_vm1, %v6983_v41 }
 0x192   : > { %5464 = vmatprep.mubr.msk.f32.mxu0 %vm414_vm1, %v6985_v37 }
 0x194   : > { %v5000_v48 = vpop.f32.mrb[0].mxu0 }
 0x195   : > { %v5001_v56 = vpop.f32.mrb[1].mxu0  ;;  %5465 = vmatmul.mubr.msk.f32.gmra.mrb[10].mxu0 %vm414_vm1, %v6991_v54 }
 0x196   : > { %v5002_v47 = vadd.f32 %v5001_v56, %v5000_v48  ;;  %5467 = vmatprep.mubr.msk.f32.mxu0 %vm414_vm1, %v6993_v33  ;;  %v6150_v33 = vld [vmem:[#allocation2 + $0x21] sm:$0xff]  ;;  %v6162_v48 = vld [vmem:[#allocation2 + $0xd9] sm:$0xff] }
 0x197   : > { %v522_v37 = vsel %vm414_vm1, %v6150_v33, 0.0  ;;  %v552_v56 = vsel %vm414_vm1, %v6162_v48, 0.0 }
 0x198   : > { %726 = vst.msk [vmem:[%s7449_s24] sm:$0xf] %vm725_vm4, %v5002_v47  ;;  %s6178_s24 = scalar_lea.vmem %s7678_s19, 64 }
 0x199   : > { %5468 = vmatmul.mubr.msk.f32.gmra.mrb[12].mxu0 %vm414_vm1, %v6999_v26  ;;  %p6179_p12 = scmp.ne.s32.totalorder %s7678_s19, %s6178_s24  ;;  %p6186_p2 = scmp.lt.s32.totalorder %s6184_s22, %s6178_s24 }
 0x19a   : > { %5470 = vmatprep.mubr.msk.f32.mxu0 %vm414_vm1, %v7001_v22  ;;  %v2225_v22 = vld [vmem:[#allocation2 + $0x51] sm:$0xff] }
 0x19b   : > { %p6180_p13 = pnand %p6179_p12, %p6442_p4  ;;  %p6187_p3 = por %p6186_p2, %p6185_p1 }
 0x19d   : > { %5471 = vmatmul.mubr.msk.f32.gmra.mrb[14].mxu0 %vm414_vm1, %v7010_v50  ;;  %v2220_v50 = vld [vmem:[#allocation2 + $0x19] sm:$0xff]  ;;  %p6181_p0 = pneg %p6180_p13 }
 0x19e   : > { %5473 = vmatprep.mubr.msk.f32.mxu0 %vm414_vm1, %v7012_v16  ;;  %v2224_v16 = vld [vmem:[#allocation2 + $0x49] sm:$0xff] }
 0x19f   : > { %p6188_p5 = pnand %p6187_p3, %p6181_p0 }
 0x1a1   : > { %5474 = vmatmul.mubr.msk.f32.gmra.mrb[16].mxu0 %vm414_vm1, %v7022_v51  ;;  %v6152_v51 = vld [vmem:[#allocation2 + $0x39] sm:$0xff] }
 0x1a2   : > { %5476 = vmatprep.mubr.msk.f32.mxu0 %vm414_vm1, %v7030_v46  ;;  %v526_v46 = vsel %vm414_vm1, %v6152_v51, 0.0 }
 0x1a5   : > { %5477 = vmatmul.mubr.msk.f32.gmra.mrb[18].mxu0 %vm414_vm1, %v7041_v18 }
 0x1a6   : > { %5479 = vmatprep.mubr.msk.f32.mxu0 %vm414_vm1, %v7045_v23  ;;  %v528_v23 = vsel %vm414_vm1, %v6696_v63, 0.0  ;;  %v538_v63 = vsel %vm414_vm1, %v6156_v15, 0.0 }
 0x1a9   : > { %5480 = vmatmul.mubr.msk.f32.gmra.mrb[20].mxu0 %vm414_vm1, %v7053_v29 }
 0x1aa   : > { %5482 = vmatprep.mubr.msk.f32.mxu0 %vm414_vm1, %v7057_v17  ;;  %v530_v17 = vsel %vm414_vm1, %v6708_v3, 0.0  ;;  %v540_v3 = vsel %vm414_vm1, %v6157_v20, 0.0 }
 0x1ad   : > { %5483 = vmatmul.mubr.msk.f32.gmra.mrb[22].mxu0 %vm414_vm1, %v7065_v34 }
 0x1ae   : > { %5485 = vmatprep.mubr.msk.f32.mxu0 %vm414_vm1, %v7069_v13  ;;  %v2223_v13 = vld [vmem:[#allocation2 + $0x39] sm:$0xff] }
 0x1b1   : > { %5486 = vmatmul.mubr.msk.f32.gmra.mrb[24].mxu0 %vm414_vm1, %v7077_v12  ;;  %v2222_v12 = vld [vmem:[#allocation2 + $0x31] sm:$0xff] }
 0x1b2   : > { %5488 = vmatprep.mubr.msk.f32.mxu0 %vm414_vm1, %v7081_v11  ;;  %v2221_v11 = vld [vmem:[#allocation2 + $0x21] sm:$0xff] }
 0x1b5   : > { %5489 = vmatmul.mubr.msk.f32.gmra.mrb[26].mxu0 %vm414_vm1, %v7089_v27  ;;  %v6153_v27 = vld [vmem:[#allocation2 + $0x61] sm:$0xff] }
 0x1b6   : > { %5491 = vmatprep.mubr.msk.f32.mxu0 %vm414_vm1, %v8184_v5 }
 0x1b9   : > { %5492 = vmatmul.mubr.msk.f32.gmra.mrb[28].mxu0 %vm414_vm1, %v8187_v10  ;;  %v536_v10 = vsel %vm414_vm1, %v6155_v9, 0.0 }
 0x1ba   : > { %5494 = vmatprep.mubr.msk.f32.mxu0 %vm414_vm1, %v8188_v14 }
 0x1bd   : > { %5495 = vmatmul.mubr.msk.f32.gmra.mrb[30].mxu0 %vm414_vm1, %v7113_v36 }
 0x1be   : > { %5497 = vmatprep.mubr.msk.f32.mxu0 %vm414_vm1, %v7117_v7  ;;  %v6149_v7 = vld [vmem:[#allocation2 + $0x19] sm:$0xff] }
 0x1bf   : > { %v521_v26 = vsel %vm414_vm1, %v6149_v7, 0.0  ;;  %v6164_v7 = vld [vmem:[#allocation2 + $0xf1] sm:$0xff] }
 0x1c0   : > { %v523_v41 = vadd.f32 %v522_v37, %v521_v26  ;;  %v556_v26 = vsel %vm414_vm1, %v6164_v7, 0.0 }
 0x1c1   : > { %5498 = vmatmul.mubr.msk.f32.gmra.mrb[32].mxu0 %vm414_vm1, %v7125_v28  ;;  %v532_v28 = vsel %vm414_vm1, %v6153_v27, 0.0  ;;  %v6167_v27 = vld [vmem:[#allocation2 + $0x111] sm:$0xff] }
 0x1c2   : > { %5502 = vmatprep.mubr.msk.f32.mxu0 %vm414_vm1, %v2220_v50  ;;  %v525_v54 = vadd.f32 %v524_v52, %v523_v41  ;;  %v558_v52 = vsel %vm414_vm1, %v6165_v49, 0.0 }
 0x1c4   : > { %v527_v18 = vadd.f32 %v526_v46, %v525_v54 }
 0x1c5   : > { %5503 = vmatmul.mubr.msk.f32.vlgmr.msra.gmra.mrb[2].mxu0 %vm414_vm1, %v2221_v11 }
 0x1c6   : > { %5505 = vmatprep.mubr.msk.f32.mxu0 %vm414_vm1, %v2222_v12  ;;  %v529_v29 = vadd.f32 %v528_v23, %v527_v18  ;;  %v6163_v12 = vld [vmem:[#allocation2 + $0xe1] sm:$0xff]  ;;  %v6166_v18 = vld [vmem:[#allocation2 + $0x109] sm:$0xff] }
 0x1c7   : > { %v560_v23 = vsel %vm414_vm1, %v6166_v18, 0.0 }
 0x1c8   : > { %v531_v34 = vadd.f32 %v530_v17, %v529_v29 }
 0x1c9   : > { %5506 = vmatmul.mubr.msk.f32.gmra.mrb[4].mxu0 %vm414_vm1, %v2223_v13  ;;  %v554_v13 = vsel %vm414_vm1, %v6163_v12, 0.0 }
 0x1ca   : > { %5508 = vmatprep.mubr.msk.f32.mxu0 %vm414_vm1, %v2224_v16  ;;  %v533_v36 = vadd.f32 %v532_v28, %v531_v34  ;;  %v562_v28 = vsel %vm414_vm1, %v6167_v27, 0.0 }
 0x1cc   : > { %v535_v5 = vadd.f32 %v534_v57, %v533_v36 }
 0x1cd   : > { %5509 = vmatmul.mubr.msk.f32.gmra.mrb[6].mxu0 %vm414_vm1, %v2225_v22 }
 0x1ce   : > { %v537_v14 = vadd.f32 %v536_v10, %v535_v5  ;;  %v6168_v5 = vld [vmem:[#allocation2 + $0x121] sm:$0xff] }
 0x1cf   : > { %v564_v9 = vsel %vm414_vm1, %v6168_v5, 0.0 }
 0x1d0   : > { %v539_v19 = vadd.f32 %v538_v63, %v537_v14  ;;  %v6169_v63 = vld [vmem:[#allocation2 + $0x129] sm:$0xff] }
 0x1d2   : > { %v541_v24 = vadd.f32 %v540_v3, %v539_v19  ;;  %v566_v19 = vsel %vm414_vm1, %v6169_v63, 0.0 }
 0x1d4   : > { %v543_v35 = vadd.f32 %v542_v21, %v541_v24  ;;  %v568_v21 = vsel %vm414_vm1, %v6170_v25, 0.0 }
 0x1d6   : > { %v545_v42 = vadd.f32 %v544_v40, %v543_v35 }
 0x1d8   : > { %v547_v58 = vadd.f32 %v546_v53, %v545_v42  ;;  %v6171_v42 = vld [vmem:[#allocation2 + $0x141] sm:$0xff] }
 0x1d9   : > { %v570_v43 = vsel %vm414_vm1, %v6171_v42, 0.0 }
 0x1da   : > { %v549_v8 = vadd.f32 %v548_v0, %v547_v58  ;;  %v6172_v0 = vld [vmem:[#allocation2 + $0x151] sm:$0xff] }
 0x1dc   : > { %v551_v6 = vadd.f32 %v550_v32, %v549_v8  ;;  %v572_v8 = vsel %vm414_vm1, %v6172_v0, 0.0 }
 0x1de   : > { %v553_v11 = vadd.f32 %v552_v56, %v551_v6  ;;  %v6173_v56 = vld [vmem:[#allocation2 + $0x159] sm:$0xff] }
 0x1e0   : > { %v555_v1 = vadd.f32 %v554_v13, %v553_v11  ;;  %v574_v11 = vsel %vm414_vm1, %v6173_v56, 0.0  ;;  %v6174_v13 = vld [vmem:[#allocation2 + $0x169] sm:$0xff] }
 0x1e2   : > { %v557_v41 = vadd.f32 %v556_v26, %v555_v1  ;;  %v576_v1 = vsel %vm414_vm1, %v6174_v13, 0.0  ;;  %v6175_v26 = vld [vmem:[#allocation2 + $0x171] sm:$0xff] }
 0x1e4   : > { %v559_v46 = vadd.f32 %v558_v52, %v557_v41  ;;  %v578_v41 = vsel %vm414_vm1, %v6175_v26, 0.0  ;;  %v6176_v52 = vld [vmem:[#allocation2 + $0x181] sm:$0xff] }
 0x1e6   : > { %v561_v34 = vadd.f32 %v560_v23, %v559_v46  ;;  %v580_v46 = vsel %vm414_vm1, %v6176_v52, 0.0  ;;  %v6177_v23 = vld [vmem:[#allocation2 + $0x189] sm:$0xff] }
 0x1e8   : > { %v563_v57 = vadd.f32 %v562_v28, %v561_v34  ;;  %v582_v34 = vsel %vm414_vm1, %v6177_v23, 0.0 }
 0x1ea   : > { %v565_v15 = vadd.f32 %v564_v9, %v563_v57 }
 0x1ec   : > { %v567_v24 = vadd.f32 %v566_v19, %v565_v15 }
 0x1ee   : > { %v569_v40 = vadd.f32 %v568_v21, %v567_v24 }
 0x1f0   : > { %v571_v62 = vadd.f32 %v570_v43, %v569_v40 }
 0x1f2   : > { %v573_v48 = vadd.f32 %v572_v8, %v571_v62 }
 0x1f4   : > { %v575_v12 = vadd.f32 %v574_v11, %v573_v48 }
 0x1f6   : > { %v577_v7 = vadd.f32 %v576_v1, %v575_v12 }
 0x1f8   : > { %v579_v49 = vadd.f32 %v578_v41, %v577_v7 }
 0x1fa   : > { %v581_v18 = vadd.f32 %v580_v46, %v579_v49 }
 0x1fc   : > { %v583_v27 = vadd.f32 %v582_v34, %v581_v18 }
 0x1fe   : > { %v584_v28 = vrot.slane %v583_v27, 4 }
 0x200   : > { %v585_v57 = vadd.f32 %v584_v28, %v583_v27 }
 0x202   : > { %v7514_v31 = vpop.f32.mrb[26].mxu1  ;;  %v586_v5 = vrot.slane %v585_v57, 2 }
 0x203   : > { %v7516_v30 = vpop.f32.mrb[27].mxu1 }
 0x204   : > { %v587_v9 = vadd.f32 %v586_v5, %v585_v57 }
 0x206   : > { %v7519_v44 = vpop.f32.mrb[28].mxu1  ;;  %v588_v62 = vrot.slane %v587_v9, 1 }
 0x207   : > { %v7521_v45 = vpop.f32.mrb[29].mxu1 }
 0x208   : > { %v589_v12 = vadd.f32 %v588_v62, %v587_v9 }
 0x20a   : > { %v7524_v59 = vpop.f32.mrb[30].mxu1  ;;  %590 = vst.msk [vmem:[%s8148_s21] sm:$0x1] %vm424_vm2, %v589_v12 }
 0x20b   : > { %v7526_v55 = vpop.f32.mrb[31].mxu1 }
 0x20e   : > { %v7529_v4 = vpop.f32.mrb[0].mxu1 }
 0x20f   : > { %v7531_v2 = vpop.f32.mrb[1].mxu1 }
 0x212   : > { %v7535_v60 = vpop.f32.mrb[2].mxu1 }
 0x213   : > { %v7537_v61 = vpop.f32.mrb[3].mxu1 }
 0x216   : > { %v7540_v47 = vpop.f32.mrb[4].mxu1 }
 0x217   : > { %v7542_v50 = vpop.f32.mrb[5].mxu1 }
 0x21a   : > { %v7545_v16 = vpop.f32.mrb[6].mxu1 }
 0x21b   : > { %v7547_v22 = vpop.f32.mrb[7].mxu1 }
 0x21e   : > { %v7550_v33 = vpop.f32.mrb[8].mxu1 }
 0x21f   : > { %v7552_v37 = vpop.f32.mrb[9].mxu1 }
 0x222   : > { %v7555_v54 = vpop.f32.mrb[10].mxu1 }
 0x223   : > { %v7557_v51 = vpop.f32.mrb[11].mxu1 }
 0x226   : > { %v7560_v29 = vpop.f32.mrb[12].mxu1 }
 0x227   : > { %v7562_v17 = vpop.f32.mrb[13].mxu1 }
 0x22a   : > { %v7565_v36 = vpop.f32.mrb[14].mxu1 }
 0x22b   : > { %v7567_v38 = vpop.f32.mrb[15].mxu1 }
 0x22e   : > { %v7570_v10 = vpop.f32.mrb[16].mxu1 }
 0x22f   : > { %v7572_v14 = vpop.f32.mrb[17].mxu1 }
 0x232   : > { %v7575_v20 = vpop.f32.mrb[18].mxu1 }
 0x233   : > { %v7577_v3 = vpop.f32.mrb[19].mxu1 }
 0x236   : > { %v7580_v35 = vpop.f32.mrb[20].mxu1 }
 0x237   : > { %v7582_v39 = vpop.f32.mrb[21].mxu1 }
 0x23a   : > { %v7585_v53 = vpop.f32.mrb[22].mxu1 }
 0x23b   : > { %v7587_v58 = vpop.f32.mrb[23].mxu1 }
 0x23e   : > { %v7590_v32 = vpop.f32.mrb[24].mxu1 }
 0x23f   : > { %v7592_v6 = vpop.f32.mrb[25].mxu1 }
 0x264   : > { %v5463_v15 = vpop.f32.mrb[8].mxu0 }
 0x265   : > { %v5790_v63 = vadd.f32 %v7529_v4, %v5463_v15  ;;  %v2059_v19 = vpop.f32.mrb[9].mxu0 }
 0x266   : > { %v5791_v24 = vadd.f32 %v7531_v2, %v2059_v19 }
 0x267   : > { %4174 = vst.msk [vmem:[%s7604_s12 + $0x38] sm:$0xff] %vm4166_vm5, %v5790_v63  ;;  %v7611_v25 = vsel %vm4166_vm5, %v5790_v63, 0.0  ;;  %v4277_v21 = vmul.f32 %v5790_v63, %v5790_v63 }
 0x268   : > { %4173 = vst.msk [vmem:[%s7604_s12 + $0x30] sm:$0xff] %vm4166_vm5, %v5791_v24  ;;  %v7616_v40 = vsel %vm4166_vm5, %v5791_v24, 0.0  ;;  %v4276_v42 = vmul.f32 %v5791_v24, %v5791_v24  ;;  %v5466_v43 = vpop.f32.mrb[10].mxu0 }
 0x269   : > { %v7619_v4 = vsel %vm4166_vm5, %v4277_v21, 0.0  ;;  %v5792_v2 = vadd.f32 %v7535_v60, %v5466_v43  ;;  %v2069_v0 = vpop.f32.mrb[11].mxu0 }
 0x26a   : > { %v7623_v8 = vsel %vm4166_vm5, %v4276_v42, 0.0  ;;  %v5793_v48 = vadd.f32 %v7537_v61, %v2069_v0 }
 0x26b   : > { %4176 = vst.msk [vmem:[%s7604_s12 + $0x48] sm:$0xff] %vm4166_vm5, %v5792_v2  ;;  %v7629_v56 = vsel %vm4166_vm5, %v5792_v2, 0.0  ;;  %v4279_v11 = vmul.f32 %v5792_v2, %v5792_v2 }
 0x26c   : > { %4175 = vst.msk [vmem:[%s7604_s12 + $0x40] sm:$0xff] %vm4166_vm5, %v5793_v48  ;;  %v7634_v60 = vsel %vm4166_vm5, %v5793_v48, 0.0  ;;  %v4278_v13 = vmul.f32 %v5793_v48, %v5793_v48  ;;  %v5469_v1 = vpop.f32.mrb[12].mxu0 }
 0x26d   : > { %v7637_v7 = vsel %vm4166_vm5, %v4279_v11, 0.0  ;;  %v5794_v61 = vadd.f32 %v7540_v47, %v5469_v1  ;;  %v2079_v26 = vpop.f32.mrb[13].mxu0 }
 0x26e   : > { %v7641_v41 = vsel %vm4166_vm5, %v4278_v13, 0.0  ;;  %v5795_v49 = vadd.f32 %v7542_v50, %v2079_v26 }
 0x26f   : > { %4178 = vst.msk [vmem:[%s7604_s12 + $0x58] sm:$0xff] %vm4166_vm5, %v5794_v61  ;;  %v7647_v52 = vsel %vm4166_vm5, %v5794_v61, 0.0  ;;  %v4281_v46 = vmul.f32 %v5794_v61, %v5794_v61 }
 0x270   : > { %4177 = vst.msk [vmem:[%s7604_s12 + $0x50] sm:$0xff] %vm4166_vm5, %v5795_v49  ;;  %v7656_v47 = vsel %vm4166_vm5, %v5795_v49, 0.0  ;;  %v4280_v18 = vmul.f32 %v5795_v49, %v5795_v49  ;;  %v5472_v50 = vpop.f32.mrb[14].mxu0 }
 0x271   : > { %v7659_v23 = vsel %vm4166_vm5, %v4281_v46, 0.0  ;;  %v5796_v34 = vadd.f32 %v7545_v16, %v5472_v50  ;;  %v2089_v27 = vpop.f32.mrb[15].mxu0 }
 0x272   : > { %v7664_v28 = vsel %vm4166_vm5, %v4280_v18, 0.0  ;;  %v5797_v57 = vadd.f32 %v7547_v22, %v2089_v27 }
 0x273   : > { %4180 = vst.msk [vmem:[%s7604_s12 + $0x68] sm:$0xff] %vm4166_vm5, %v5796_v34  ;;  %v7676_v5 = vsel %vm4166_vm5, %v5796_v34, 0.0  ;;  %v4283_v16 = vmul.f32 %v5796_v34, %v5796_v34 }
 0x274   : > { %4179 = vst.msk [vmem:[%s7604_s12 + $0x60] sm:$0xff] %vm4166_vm5, %v5797_v57  ;;  %v7683_v22 = vsel %vm4166_vm5, %v5797_v57, 0.0  ;;  %v4282_v9 = vmul.f32 %v5797_v57, %v5797_v57  ;;  %v5475_v15 = vpop.f32.mrb[16].mxu0 }
 0x275   : > { %6191 = shalt.err (!%p6188_p5)
}
 0x276   : > { %s6192_s14 = scalar_lea.hbm %s7670_s18, 64  ;;  %s6196_s25 = scalar_lea.hbm %s8094_s8, 128 }
 0x277   : > { %p6193_p6 = scmp.ne.s32.totalorder %s7670_s18, %s6192_s14  ;;  %p6197_p10 = scmp.lt.u32.totalorder %s7670_s18, %s8094_s8 }
 0x278   : > { %p6198_p11 = scmp.lt.u32.totalorder %s6196_s25, %s6192_s14  ;;  %p6200_p13 = scmp.lt.u32.totalorder %s6192_s14, %s7670_s18 }
 0x279   : > { %p6194_p7 = pnand %p6193_p6, %p6442_p4 }
 0x27a   : > { %p6199_p12 = por %p6198_p11, %p6197_p10 }
 0x27b   : > { %p6195_p9 = pneg %p6194_p7 }
 0x27c   : > { %p6201_p0 = por %p6200_p13, %p6199_p12 }
 0x27e   : > { %p6202_p1 = pnand %p6201_p0, %p6195_p9 }
 0x280   : > { %6205 = shalt.err (!%p6202_p1)
}
 0x281   : > { %6043 = dma.vmem_to_hbm [thread:$0]  (%p6442_p4), %s7678_s19, 64, %s7670_s18, %s4393_s23   ;;  %v7708_v63 = vsel %vm4166_vm5, %v4283_v16, 0.0  ;;  %v5798_v19 = vadd.f32 %v7550_v33, %v5475_v15  ;;  %v2099_v24 = vpop.f32.mrb[17].mxu0  ;;  %v7712_v21 = vsel %vm4166_vm5, %v4282_v9, 0.0  ;;  %vm4268_vm6 = vcmask 57344  }
 0x282   : > { %v5799_v42 = vadd.f32 %v7552_v37, %v2099_v24  ;;  %v5478_v0 = vpop.f32.mrb[18].mxu0  ;;  %s7959_s10 = sand.u32 1, %s4651_s9   ;;  %s345_s21 = scalar_lea.vmem [#allocation3], %s7438_s20 }
 0x283   : > { %4182 = vst.msk [vmem:[%s7604_s12 + $0x78] sm:$0xff] %vm4166_vm5, %v5798_v19  ;;  %v7718_v43 = vsel %vm4166_vm5, %v5798_v19, 0.0  ;;  %v4285_v62 = vmul.f32 %v5798_v19, %v5798_v19  ;;  %v5800_v11 = vadd.f32 %v7555_v54, %v5478_v0  ;;  %v2109_v37 = vpop.f32.mrb[19].mxu0  ;;  %s4410_s18 = sshll.u32 %s345_s21, 4  ;;  %s8149_s19 = scalar_lea.vmem [#allocation5], %s7438_s20  ;;  %s7973_s18 = int_to_ptr.vmem [resolvable:$true] %s4410_s18 }
 0x284   : > { %4181 = vst.msk [vmem:[%s7604_s12 + $0x70] sm:$0xff] %vm4166_vm5, %v5799_v42  ;;  %v7723_v2 = vsel %vm4166_vm5, %v5799_v42, 0.0  ;;  %v4284_v33 = vmul.f32 %v5799_v42, %v5799_v42  ;;  %v5801_v13 = vadd.f32 %v7557_v51, %v2109_v37  ;;  %v5481_v49 = vpop.f32.mrb[20].mxu0  ;;  %s4424_s23 = sshll.u32 %s8149_s19, 4  ;;  %s8228_s24 = scalar_lea.vmem [#allocation7], %s7438_s20  ;;  %s7980_s23 = int_to_ptr.vmem [resolvable:$true] %s4424_s23 }
 0x285   : > { %v7726_v48 = vsel %vm4166_vm5, %v4285_v62, 0.0  ;;  %4184 = vst.msk [vmem:[%s7604_s12 + $0x88] sm:$0xff] %vm4166_vm5, %v5800_v11  ;;  %v7736_v1 = vsel %vm4166_vm5, %v5800_v11, 0.0  ;;  %v4287_v61 = vmul.f32 %v5800_v11, %v5800_v11  ;;  %v5802_v18 = vadd.f32 %v7560_v29, %v5481_v49  ;;  %v2119_v51 = vpop.f32.mrb[21].mxu0  ;;  %s4437_s22 = sshll.u32 %s8228_s24, 4  ;;  %s4381_s9 = scalar_lea.sflag [#allocation4], %s7438_s20  ;;  %s7988_s22 = int_to_ptr.vmem [resolvable:$true] %s4437_s22 }
 0x286   : > { %v7730_v12 = vsel %vm4166_vm5, %v4284_v33, 0.0  ;;  %4183 = vst.msk [vmem:[%s7604_s12 + $0x80] sm:$0xff] %vm4166_vm5, %v5801_v13  ;;  %v7741_v26 = vsel %vm4166_vm5, %v5801_v13, 0.0  ;;  %v4286_v54 = vmul.f32 %v5801_v13, %v5801_v13  ;;  %v5803_v34 = vadd.f32 %v7562_v17, %v2119_v51  ;;  %v5484_v9 = vpop.f32.mrb[22].mxu0  ;;  %s6206_s0 = scalar_lea.vmem %s7973_s18, 16 }
 0x287   : > { %v7744_v46 = vsel %vm4166_vm5, %v4287_v61, 0.0  ;;  %4186 = vst.msk [vmem:[%s7604_s12 + $0x98] sm:$0xff] %vm4166_vm5, %v5802_v18  ;;  %v7754_v27 = vsel %vm4166_vm5, %v5802_v18, 0.0  ;;  %v4289_v57 = vmul.f32 %v5802_v18, %v5802_v18  ;;  %v5804_v19 = vadd.f32 %v7565_v36, %v5484_v9  ;;  %v2129_v17 = vpop.f32.mrb[23].mxu0  ;;  %p6207_p2 = scmp.ne.s32.totalorder %s7973_s18, %s6206_s0 }
 0x288   : > { %v7748_v50 = vsel %vm4166_vm5, %v4286_v54, 0.0  ;;  %4185 = vst.msk [vmem:[%s7604_s12 + $0x90] sm:$0xff] %vm4166_vm5, %v5803_v34  ;;  %v7759_v16 = vsel %vm4166_vm5, %v5803_v34, 0.0  ;;  %v4288_v29 = vmul.f32 %v5803_v34, %v5803_v34  ;;  %v5805_v42 = vadd.f32 %v7567_v38, %v2129_v17  ;;  %v5487_v11 = vpop.f32.mrb[24].mxu0 }
 0x289   : > { %v7762_v15 = vsel %vm4166_vm5, %v4289_v57, 0.0  ;;  %4188 = vst.msk [vmem:[%s7604_s12 + $0xa8] sm:$0xff] %vm4166_vm5, %v5804_v19  ;;  %v7772_v62 = vsel %vm4166_vm5, %v5804_v19, 0.0  ;;  %v4291_v33 = vmul.f32 %v5804_v19, %v5804_v19  ;;  %v5806_v13 = vadd.f32 %v7570_v10, %v5487_v11  ;;  %v2139_v38 = vpop.f32.mrb[25].mxu0  ;;  %p6208_p3 = pnand %p6207_p2, %p6442_p4 }
 0x28a   : > { %v7766_v24 = vsel %vm4166_vm5, %v4288_v29, 0.0  ;;  %4187 = vst.msk [vmem:[%s7604_s12 + $0xa0] sm:$0xff] %vm4166_vm5, %v5805_v42  ;;  %v7777_v0 = vsel %vm4166_vm5, %v5805_v42, 0.0  ;;  %v4290_v36 = vmul.f32 %v5805_v42, %v5805_v42  ;;  %v5807_v54 = vadd.f32 %v7572_v14, %v2139_v38  ;;  %v5490_v34 = vpop.f32.mrb[26].mxu0 }
 0x28b   : > { %v7780_v37 = vsel %vm4166_vm5, %v4291_v33, 0.0  ;;  %4190 = vst.msk [vmem:[%s7604_s12 + $0xb8] sm:$0xff] %vm4166_vm5, %v5806_v13  ;;  %v7790_v49 = vsel %vm4166_vm5, %v5806_v13, 0.0  ;;  %v4293_v18 = vmul.f32 %v5806_v13, %v5806_v13  ;;  %v5808_v29 = vadd.f32 %v7575_v20, %v5490_v34  ;;  %v2149_v14 = vpop.f32.mrb[27].mxu0  ;;  %p6209_p5 = pneg %p6208_p3 }
 0x28c   : > { %v7784_v61 = vsel %vm4166_vm5, %v4290_v36, 0.0  ;;  %4189 = vst.msk [vmem:[%s7604_s12 + $0xb0] sm:$0xff] %vm4166_vm5, %v5807_v54  ;;  %v7795_v51 = vsel %vm4166_vm5, %v5807_v54, 0.0  ;;  %v4292_v10 = vmul.f32 %v5807_v54, %v5807_v54  ;;  %v5809_v19 = vadd.f32 %v7577_v3, %v2149_v14  ;;  %v5493_v36 = vpop.f32.mrb[28].mxu0 }
 0x28d   : > { %v7798_v57 = vsel %vm4166_vm5, %v4293_v18, 0.0  ;;  %4192 = vst.msk [vmem:[%s7604_s12 + $0xc8] sm:$0xff] %vm4166_vm5, %v5808_v29  ;;  %v7808_v17 = vsel %vm4166_vm5, %v5808_v29, 0.0  ;;  %v4295_v42 = vmul.f32 %v5808_v29, %v5808_v29  ;;  %v5810_v13 = vadd.f32 %v7580_v35, %v5493_v36  ;;  %v2159_v3 = vpop.f32.mrb[29].mxu0 }
 0x28e   : > { %v7802_v9 = vsel %vm4166_vm5, %v4292_v10, 0.0  ;;  %4191 = vst.msk [vmem:[%s7604_s12 + $0xc0] sm:$0xff] %vm4166_vm5, %v5809_v19  ;;  %v7813_v33 = vsel %vm4166_vm5, %v5809_v19, 0.0  ;;  %v4294_v20 = vmul.f32 %v5809_v19, %v5809_v19  ;;  %v5811_v54 = vadd.f32 %v7582_v39, %v2159_v3 }
 0x28f   : > { %v7816_v11 = vsel %vm4166_vm5, %v4295_v42, 0.0  ;;  %4194 = vst.msk [vmem:[%s7604_s12 + $0xd8] sm:$0xff] %vm4166_vm5, %v5810_v13  ;;  %v7826_v18 = vsel %vm4166_vm5, %v5810_v13, 0.0  ;;  %v4297_v10 = vmul.f32 %v5810_v13, %v5810_v13 }
 0x290   : > { %v7820_v38 = vsel %vm4166_vm5, %v4294_v20, 0.0  ;;  %4193 = vst.msk [vmem:[%s7604_s12 + $0xd0] sm:$0xff] %vm4166_vm5, %v5811_v54  ;;  %v7831_v34 = vsel %vm4166_vm5, %v5811_v54, 0.0  ;;  %v4296_v35 = vmul.f32 %v5811_v54, %v5811_v54  ;;  %v5496_v29 = vpop.f32.mrb[30].mxu0 }
 0x291   : > { %v7834_v14 = vsel %vm4166_vm5, %v4297_v10, 0.0  ;;  %v5812_v19 = vadd.f32 %v7585_v53, %v5496_v29  ;;  %v2169_v39 = vpop.f32.mrb[31].mxu0 }
 0x292   : > { %v7838_v42 = vsel %vm4166_vm5, %v4296_v35, 0.0  ;;  %v5813_v20 = vadd.f32 %v7587_v58, %v2169_v39 }
 0x293   : > { %4196 = vst.msk [vmem:[%s7604_s12 + $0xe8] sm:$0xff] %vm4166_vm5, %v5812_v19  ;;  %v7844_v36 = vsel %vm4166_vm5, %v5812_v19, 0.0  ;;  %v4299_v13 = vmul.f32 %v5812_v19, %v5812_v19 }
 0x294   : > { %8212 = vst [vmem:[#allocation38_spill] sm:$0xff] %v7844_v36  ;;  %4195 = vst.msk [vmem:[%s7604_s12 + $0xe0] sm:$0xff] %vm4166_vm5, %v5813_v20  ;;  %v7849_v3 = vsel %vm4166_vm5, %v5813_v20, 0.0  ;;  %v4298_v53 = vmul.f32 %v5813_v20, %v5813_v20  ;;  %v5499_v54 = vpop.f32.mrb[32].mxu0 }
 0x295   : > { %8213 = vst [vmem:[#allocation15_spill] sm:$0xff] %v7849_v3  ;;  %v7852_v10 = vsel %vm4166_vm5, %v4299_v13, 0.0  ;;  %v5814_v35 = vadd.f32 %v7590_v32, %v5499_v54  ;;  %v2179_v58 = vpop.f32.mrb[33].mxu0 }
 0x296   : > { %8214 = vst [vmem:[#allocation16_spill] sm:$0xff] %v7852_v10  ;;  %v7856_v29 = vsel %vm4166_vm5, %v4298_v53, 0.0  ;;  %v5815_v39 = vadd.f32 %v7592_v6, %v2179_v58 }
 0x297   : > { %8215 = vst [vmem:[#allocation39_spill] sm:$0xff] %v7856_v29  ;;  %4198 = vst.msk [vmem:[%s7604_s12 + $0xf8] sm:$0xff] %vm4166_vm5, %v5814_v35  ;;  %v7862_v19 = vsel %vm4166_vm5, %v5814_v35, 0.0  ;;  %v4301_v20 = vmul.f32 %v5814_v35, %v5814_v35 }
 0x298   : > { %8216 = vst [vmem:[#allocation40_spill] sm:$0xff] %v7862_v19  ;;  %4197 = vst.msk [vmem:[%s7604_s12 + $0xf0] sm:$0xff] %vm4166_vm5, %v5815_v39  ;;  %v7867_v13 = vsel %vm4166_vm5, %v5815_v39, 0.0  ;;  %v4300_v32 = vmul.f32 %v5815_v39, %v5815_v39  ;;  %v5504_v54 = vpop.f32.mrb[2].mxu0 }
 0x299   : > { %8217 = vst [vmem:[#allocation17_spill] sm:$0xff] %v7867_v13  ;;  %v7870_v10 = vsel %vm4166_vm5, %v4301_v20, 0.0  ;;  %v5784_v53 = vadd.f32 %v7514_v31, %v5504_v54  ;;  %v2418_v6 = vpop.f32.mrb[3].mxu0 }
 0x29a   : > { %8218 = vst [vmem:[#allocation18_spill] sm:$0xff] %v7870_v10  ;;  %v7874_v58 = vsel %vm4166_vm5, %v4300_v32, 0.0  ;;  %v5785_v19 = vadd.f32 %v7516_v30, %v2418_v6 }
 0x29b   : > { %8219 = vst [vmem:[#allocation19_spill] sm:$0xff] %v7874_v58  ;;  %4168 = vst.msk [vmem:[%s7604_s12 + $0x8] sm:$0xff] %vm4166_vm5, %v5784_v53  ;;  %v4200_v35 = vsel %vm4166_vm5, %v5784_v53, 0.0  ;;  %v4271_v13 = vmul.f32 %v5784_v53, %v5784_v53 }
 0x29c   : > { %4167 = vst.msk [vmem:[%s7604_s12] sm:$0xff] %vm4166_vm5, %v5785_v19  ;;  %v4199_v39 = vsel %vm4166_vm5, %v5785_v19, 0.0  ;;  %v4270_v20 = vmul.f32 %v5785_v19, %v5785_v19  ;;  %v5507_v10 = vpop.f32.mrb[4].mxu0 }
 0x29d   : > { %v4303_v31 = vsel %vm4166_vm5, %v4271_v13, 0.0  ;;  %v4201_v54 = vadd.f32 %v4200_v35, %v4199_v39  ;;  %v5786_v32 = vadd.f32 %v7519_v44, %v5507_v10  ;;  %v2428_v58 = vpop.f32.mrb[5].mxu0 }
 0x29e   : > { %v4302_v30 = vsel %vm4166_vm5, %v4270_v20, 0.0  ;;  %v5787_v6 = vadd.f32 %v7521_v45, %v2428_v58 }
 0x29f   : > { %v4304_v36 = vadd.f32 %v4303_v31, %v4302_v30  ;;  %4170 = vst.msk [vmem:[%s7604_s12 + $0x18] sm:$0xff] %vm4166_vm5, %v5786_v32  ;;  %v4273_v53 = vmul.f32 %v5786_v32, %v5786_v32  ;;  %v4204_v39 = vsel %vm4166_vm5, %v5786_v32, 0.0 }
 0x2a0   : > { %4169 = vst.msk [vmem:[%s7604_s12 + $0x10] sm:$0xff] %vm4166_vm5, %v5787_v6  ;;  %v4202_v19 = vsel %vm4166_vm5, %v5787_v6, 0.0  ;;  %v4272_v29 = vmul.f32 %v5787_v6, %v5787_v6  ;;  %v5510_v13 = vpop.f32.mrb[6].mxu0 }
 0x2a1   : > { %v4203_v35 = vadd.f32 %v4202_v19, %v4201_v54  ;;  %v5788_v44 = vadd.f32 %v7524_v59, %v5510_v13  ;;  %v2438_v10 = vpop.f32.mrb[7].mxu0  ;;  %v4307_v3 = vsel %vm4166_vm5, %v4273_v53, 0.0 }
 0x2a2   : > { %v4305_v20 = vsel %vm4166_vm5, %v4272_v29, 0.0  ;;  %v5789_v45 = vadd.f32 %v7526_v55, %v2438_v10 }
 0x2a3   : > { %v4306_v58 = vadd.f32 %v4305_v20, %v4304_v36  ;;  %4172 = vst.msk [vmem:[%s7604_s12 + $0x28] sm:$0xff] %vm4166_vm5, %v5788_v44  ;;  %v4275_v31 = vmul.f32 %v5788_v44, %v5788_v44  ;;  %v4205_v30 = vadd.f32 %v4204_v39, %v4203_v35  ;;  %v4208_v29 = vsel %vm4166_vm5, %v5788_v44, 0.0 }
 0x2a4   : > { %4171 = vst.msk [vmem:[%s7604_s12 + $0x20] sm:$0xff] %vm4166_vm5, %v5789_v45  ;;  %v4206_v54 = vsel %vm4166_vm5, %v5789_v45, 0.0  ;;  %v4274_v6 = vmul.f32 %v5789_v45, %v5789_v45  ;;  %s4960_s12 = sshll.u32 %s6340_s28, 4  ;;  %s6352_s28 = smov [#allocation3]  }
 0x2a5   : > { %v4311_v59 = vsel %vm4166_vm5, %v4275_v31, 0.0  ;;  %v4207_v19 = vadd.f32 %v4206_v54, %v4205_v30  ;;  %v4308_v32 = vadd.f32 %v4307_v3, %v4306_v58  ;;  %s7971_s17 = scalar_lea.hbm %s8091_s5, %s4960_s12  ;;  %s7978_s1 = scalar_lea.hbm %s8092_s6, %s4960_s12 }
 0x2a6   : > { %v4309_v55 = vsel %vm4166_vm5, %v4274_v6, 0.0  ;;  %v8222_v6 = vld [vmem:[#allocation38_spill] sm:$0xff]  ;;  %s7986_s14 = scalar_lea.hbm %s8093_s7, %s4960_s12  ;;  %s6210_s25 = sshll.u32 %s6352_s28, 4  ;;  %s6211_s25 = int_to_ptr.vmem [resolvable:$false] %s6210_s25 }
 0x2a7   : > { %v4209_v36 = vadd.f32 %v4208_v29, %v4207_v19  ;;  %v4310_v13 = vadd.f32 %v4309_v55, %v4308_v32  ;;  %v8226_v32 = vld [vmem:[#allocation40_spill] sm:$0xff]  ;;  %v8227_v29 = vld [vmem:[#allocation18_spill] sm:$0xff]  ;;  %s6212_s3 = scalar_lea.vmem %s6211_s25, 32  ;;  %p6213_p6 = scmp.lt.s32.totalorder %s7973_s18, %s6211_s25 }
 0x2a8   : > { %p6214_p7 = scmp.lt.s32.totalorder %s6212_s3, %s6206_s0 }
 0x2a9   : > { %v4211_v10 = vadd.f32 %v7616_v40, %v4209_v36  ;;  %v4312_v35 = vadd.f32 %v4311_v59, %v4310_v13 }
 0x2aa   : > { %p6215_p9 = por %p6214_p7, %p6213_p6 }
 0x2ab   : > { %v4213_v53 = vadd.f32 %v7611_v25, %v4211_v10  ;;  %v4314_v39 = vadd.f32 %v7623_v8, %v4312_v35 }
 0x2ac   : > { %p6216_p10 = pnand %p6215_p9, %p6209_p5 }
 0x2ad   : > { %v4215_v20 = vadd.f32 %v7634_v60, %v4213_v53  ;;  %v4316_v45 = vadd.f32 %v7619_v4, %v4314_v39 }
 0x2af   : > { %v4217_v31 = vadd.f32 %v7629_v56, %v4215_v20  ;;  %v4318_v3 = vadd.f32 %v7641_v41, %v4316_v45 }
 0x2b1   : > { %v4219_v44 = vadd.f32 %v7656_v47, %v4217_v31  ;;  %v4320_v58 = vadd.f32 %v7637_v7, %v4318_v3 }
 0x2b3   : > { %v4221_v30 = vadd.f32 %v7647_v52, %v4219_v44  ;;  %v4322_v40 = vadd.f32 %v7664_v28, %v4320_v58 }
 0x2b5   : > { %v4223_v25 = vadd.f32 %v7683_v22, %v4221_v30  ;;  %v4324_v8 = vadd.f32 %v7659_v23, %v4322_v40 }
 0x2b7   : > { %v4225_v60 = vadd.f32 %v7676_v5, %v4223_v25  ;;  %v4326_v4 = vadd.f32 %v7712_v21, %v4324_v8 }
 0x2b9   : > { %v4227_v56 = vadd.f32 %v7723_v2, %v4225_v60  ;;  %v4328_v41 = vadd.f32 %v7708_v63, %v4326_v4 }
 0x2bb   : > { %v4229_v47 = vadd.f32 %v7718_v43, %v4227_v56  ;;  %v4330_v7 = vadd.f32 %v7730_v12, %v4328_v41 }
 0x2bd   : > { %v4231_v52 = vadd.f32 %v7741_v26, %v4229_v47  ;;  %v4332_v28 = vadd.f32 %v7726_v48, %v4330_v7 }
 0x2bf   : > { %v4233_v22 = vadd.f32 %v7736_v1, %v4231_v52  ;;  %v4334_v23 = vadd.f32 %v7748_v50, %v4332_v28 }
 0x2c1   : > { %v4235_v5 = vadd.f32 %v7759_v16, %v4233_v22  ;;  %v4336_v21 = vadd.f32 %v7744_v46, %v4334_v23 }
 0x2c3   : > { %v4237_v2 = vadd.f32 %v7754_v27, %v4235_v5  ;;  %v4338_v63 = vadd.f32 %v7766_v24, %v4336_v21 }
 0x2c5   : > { %v4340_v43 = vadd.f32 %v7762_v15, %v4338_v63  ;;  %v4239_v12 = vadd.f32 %v7777_v0, %v4237_v2 }
 0x2c7   : > { %v4342_v26 = vadd.f32 %v7784_v61, %v4340_v43  ;;  %v4241_v48 = vadd.f32 %v7772_v62, %v4239_v12 }
 0x2c9   : > { %v4344_v1 = vadd.f32 %v7780_v37, %v4342_v26  ;;  %v4243_v50 = vadd.f32 %v7795_v51, %v4241_v48 }
 0x2cb   : > { %v4346_v16 = vadd.f32 %v7802_v9, %v4344_v1  ;;  %v4245_v46 = vadd.f32 %v7790_v49, %v4243_v50  ;;  %v8220_v49 = vld [vmem:[#allocation15_spill] sm:$0xff] }
 0x2cd   : > { %v4348_v27 = vadd.f32 %v7798_v57, %v4346_v16  ;;  %v4247_v24 = vadd.f32 %v7813_v33, %v4245_v46  ;;  %v8221_v57 = vld [vmem:[#allocation39_spill] sm:$0xff] }
 0x2cf   : > { %v4350_v15 = vadd.f32 %v7820_v38, %v4348_v27  ;;  %v4249_v0 = vadd.f32 %v7808_v17, %v4247_v24  ;;  %v8223_v17 = vld [vmem:[#allocation16_spill] sm:$0xff] }
 0x2d1   : > { %v4352_v61 = vadd.f32 %v7816_v11, %v4350_v15  ;;  %v4251_v62 = vadd.f32 %v7831_v34, %v4249_v0  ;;  %v8224_v11 = vld [vmem:[#allocation17_spill] sm:$0xff]  ;;  %v8225_v34 = vld [vmem:[#allocation19_spill] sm:$0xff] }
 0x2d3   : > { %v4354_v37 = vadd.f32 %v7838_v42, %v4352_v61  ;;  %v4253_v51 = vadd.f32 %v7826_v18, %v4251_v62 }
 0x2d5   : > { %v4356_v9 = vadd.f32 %v7834_v14, %v4354_v37  ;;  %v4255_v54 = vadd.f32 %v8220_v49, %v4253_v51 }
 0x2d7   : > { %v4358_v33 = vadd.f32 %v8221_v57, %v4356_v9  ;;  %v4257_v38 = vadd.f32 %v8222_v6, %v4255_v54 }
 0x2d9   : > { %v4360_v59 = vadd.f32 %v8223_v17, %v4358_v33  ;;  %v4259_v19 = vadd.f32 %v8224_v11, %v4257_v38 }
 0x2db   : > { %v4362_v42 = vadd.f32 %v8225_v34, %v4360_v59  ;;  %v4261_v18 = vadd.f32 %v8226_v32, %v4259_v19 }
 0x2dd   : > { %v4364_v14 = vadd.f32 %v8227_v29, %v4362_v42  ;;  %v4262_v55 = vrot.slane %v4261_v18, 4 }
 0x2df   : > { %v4365_v36 = vrot.slane %v4364_v14, 4  ;;  %v4263_v13 = vadd.f32 %v4262_v55, %v4261_v18 }
 0x2e1   : > { %v4366_v10 = vadd.f32 %v4365_v36, %v4364_v14  ;;  %v4264_v35 = vrot.slane %v4263_v13, 2 }
 0x2e3   : > { %v4367_v53 = vrot.slane %v4366_v10, 2  ;;  %v4265_v39 = vadd.f32 %v4264_v35, %v4263_v13 }
 0x2e5   : > { %v4368_v20 = vadd.f32 %v4367_v53, %v4366_v10  ;;  %v4266_v45 = vrot.slane %v4265_v39, 1 }
 0x2e7   : > { %v4369_v31 = vrot.slane %v4368_v20, 1  ;;  %v4267_v3 = vadd.f32 %v4266_v45, %v4265_v39 }
 0x2e9   : > { %v4370_v44 = vadd.f32 %v4369_v31, %v4368_v20  ;;  %4269 = vst.msk [vmem:[%s345_s21] sm:$0x1] %vm4268_vm6, %v4267_v3 }
 0x2ea   : > { %6219 = shalt.err (!%p6216_p10)
}
 0x2eb   : > { %s6220_s12 = scalar_lea.hbm %s7971_s17, 16  ;;  %s6224_s24 = scalar_lea.hbm %s8091_s5, 32 }
 0x2ec   : > { %p6221_p11 = scmp.ne.s32.totalorder %s7971_s17, %s6220_s12  ;;  %p6225_p0 = scmp.lt.u32.totalorder %s7971_s17, %s8091_s5 }
 0x2ed   : > { %p6226_p1 = scmp.lt.u32.totalorder %s6224_s24, %s6220_s12  ;;  %p6228_p3 = scmp.lt.u32.totalorder %s6220_s12, %s7971_s17 }
 0x2ee   : > { %p6222_p12 = pnand %p6221_p11, %p6442_p4 }
 0x2ef   : > { %p6227_p2 = por %p6226_p1, %p6225_p0 }
 0x2f0   : > { %p6223_p13 = pneg %p6222_p12 }
 0x2f1   : > { %p6229_p5 = por %p6228_p3, %p6227_p2 }
 0x2f3   : > { %p6230_p6 = pnand %p6229_p5, %p6223_p13 }
 0x2f5   : > { %6233 = shalt.err (!%p6230_p6)
}
 0x2f6   : > { %6040 = dma.vmem_to_hbm [thread:$0]  (%p6442_p4), %s7973_s18, 16, %s7971_s17, %s4381_s9  }
 0x2f7   : > { %s8229_s0 = scalar_lea.vmem [#allocation5], %s7438_s20  ;;  %s4385_s3 = scalar_lea.sflag [#allocation6], %s7959_s10 }
 0x2f8   : > { %4371 = vst.msk [vmem:[%s8229_s0] sm:$0x1] %vm4268_vm6, %v4370_v44  ;;  %s6234_s21 = scalar_lea.vmem %s7980_s23, 16  ;;  %s6353_s12 = smov [#allocation5]  }
 0x2f9   : > { %p6235_p7 = scmp.ne.s32.totalorder %s7980_s23, %s6234_s21  ;;  %s6238_s19 = sshll.u32 %s6353_s12, 4  ;;  %s6239_s19 = int_to_ptr.vmem [resolvable:$false] %s6238_s19 }
 0x2fa   : > { %s6240_s24 = scalar_lea.vmem %s6239_s19, 32  ;;  %p6241_p11 = scmp.lt.s32.totalorder %s7980_s23, %s6239_s19 }
 0x2fb   : > { %p6236_p9 = pnand %p6235_p7, %p6442_p4  ;;  %p6242_p12 = scmp.lt.s32.totalorder %s6240_s24, %s6234_s21 }
 0x2fd   : > { %p6237_p10 = pneg %p6236_p9  ;;  %p6243_p13 = por %p6242_p12, %p6241_p11 }
 0x2ff   : > { %p6244_p0 = pnand %p6243_p13, %p6237_p10 }
 0x301   : > { %6247 = shalt.err (!%p6244_p0)
}
 0x302   : > { %s6248_s20 = scalar_lea.hbm %s7978_s1, 16  ;;  %s6252_s9 = scalar_lea.hbm %s8092_s6, 32 }
 0x303   : > { %p6249_p1 = scmp.ne.s32.totalorder %s7978_s1, %s6248_s20  ;;  %p6253_p5 = scmp.lt.u32.totalorder %s7978_s1, %s8092_s6 }
 0x304   : > { %p6254_p6 = scmp.lt.u32.totalorder %s6252_s9, %s6248_s20  ;;  %p6256_p9 = scmp.lt.u32.totalorder %s6248_s20, %s7978_s1 }
 0x305   : > { %p6250_p2 = pnand %p6249_p1, %p6442_p4 }
 0x306   : > { %p6255_p7 = por %p6254_p6, %p6253_p5 }
 0x307   : > { %p6251_p3 = pneg %p6250_p2 }
 0x308   : > { %p6257_p10 = por %p6256_p9, %p6255_p7 }
 0x30a   : > { %p6258_p11 = pnand %p6257_p10, %p6251_p3 }
 0x30c   : > { %6261 = shalt.err (!%p6258_p11)
}
 0x30d   : > { %6041 = dma.vmem_to_hbm [thread:$0]  (%p6442_p4), %s7980_s23, 16, %s7978_s1, %s4385_s3  }
 0x30e   : > { %s6262_s0 = scalar_lea.vmem %s7988_s22, 16  ;;  %s6354_s21 = smov [#allocation7]  }
 0x30f   : > { %p6263_p12 = scmp.ne.s32.totalorder %s7988_s22, %s6262_s0  ;;  %s6266_s12 = sshll.u32 %s6354_s21, 4  ;;  %s6267_s12 = int_to_ptr.vmem [resolvable:$false] %s6266_s12 }
 0x310   : > { %s6268_s19 = scalar_lea.vmem %s6267_s12, 32  ;;  %p6269_p1 = scmp.lt.s32.totalorder %s7988_s22, %s6267_s12 }
 0x311   : > { %p6264_p13 = pnand %p6263_p12, %p6442_p4  ;;  %p6270_p2 = scmp.lt.s32.totalorder %s6268_s19, %s6262_s0 }
 0x313   : > { %p6265_p0 = pneg %p6264_p13  ;;  %p6271_p3 = por %p6270_p2, %p6269_p1 }
 0x315   : > { %p6272_p5 = pnand %p6271_p3, %p6265_p0 }
 0x317   : > { %6275 = shalt.err (!%p6272_p5)
}
 0x318   : > { %s6276_s23 = scalar_lea.hbm %s7986_s14, 16  ;;  %s6280_s20 = scalar_lea.hbm %s8093_s7, 32 }
 0x319   : > { %p6277_p6 = scmp.ne.s32.totalorder %s7986_s14, %s6276_s23  ;;  %p6281_p10 = scmp.lt.u32.totalorder %s7986_s14, %s8093_s7 }
 0x31a   : > { %p6282_p11 = scmp.lt.u32.totalorder %s6280_s20, %s6276_s23  ;;  %p6284_p13 = scmp.lt.u32.totalorder %s6276_s23, %s7986_s14 }
 0x31b   : > { %p6278_p7 = pnand %p6277_p6, %p6442_p4 }
 0x31c   : > { %p6283_p12 = por %p6282_p11, %p6281_p10 }
 0x31d   : > { %p6279_p9 = pneg %p6278_p7 }
 0x31e   : > { %p6285_p0 = por %p6284_p13, %p6283_p12 }
 0x320   : > { %p6286_p1 = pnand %p6285_p0, %p6279_p9 }
 0x322   : > { %6289 = shalt.err (!%p6286_p1)
}
 0x323   : > { %6042 = dma.vmem_to_hbm [thread:$0]  (%p6442_p4), %s7988_s22, 16, %s7986_s14, %s4385_s3  }
 0x324 PF: > { %p6061_p2 = scmp.ge.s32.totalorder %s6348_s30, 2  ;;  %s4473_s9 = sand.u32 1, %s6328_s2  }
 0x325   : > { %s4474_s28 = scalar_lea.sflag [#allocation4], %s4473_s9 }
 0x326   : > { %p6049_p3 = pnand %p6061_p2, %p6451_p8 }
 0x328   : > { %6315 = dma.done.wait (!%p6049_p3), %s4474_s28, 16  }
 0x329   : > { %6317 = vsyncadd (!%p6049_p3), %s4474_s28, 4294967280  ;;  %s8230_s25 = sadd.s32 4294967294, %s6348_s30  }
 0x32a   : > { %s4481_s0 = sand.u32 1, %s8230_s25  }
 0x32b   : > { %s4482_s13 = scalar_lea.sflag [#allocation6], %s4481_s0 }
 0x32c   : > { %6319 = dma.done.wait (!%p6049_p3), %s4482_s13, 32  }
 0x32d   : > { %6321 = vsyncadd (!%p6049_p3), %s4482_s13, 4294967264  ;;  %s4498_s10 = scalar_lea.sflag [#allocation9], %s4473_s9 }
 0x32e   : > { %6323 = dma.done.wait (!%p6049_p3), %s4498_s10, 64  }
 0x32f   : > { %6325 = vsyncadd (!%p6049_p3), %s4498_s10, 4294967232  ;;  %s28_s30 = sadd.s32 1, %s6348_s30   ;;  %s8231_s2 = smov %s6332_s26 }
 0x330   : > { %p25_p4 = scmp.ge.s32.totalorder %s28_s30, 4   ;;  %s8232_s26 = smov %s6336_s27 }
 0x331   : > { %s8233_s27 = smov %s6457_s16  ;;  %s8234_s28 = smov %s6344_s29 }
 0x332   : > { %s8235_s29 = smov %s8237_s11  ;;  %27 = sbr.rel (!%p25_p4) target bundleno = 11 (0xb), region = 138 }
 0x339   :  { %4503 = vsyncpa [#allocation4], 1 }
 0x33a   :  { %4505 = vsyncpa [#allocation4 + $0x1], 1 }
 0x33b   :  { %4506 = vsyncpa [#allocation6], 1 }
 0x33c   :  { %4508 = vsyncpa [#allocation6 + $0x1], 1 }
 0x33d   :  { %4509 = vsyncpa [#allocation9], 1 }
 0x33e   :  { %4511 = vsyncpa [#allocation9 + $0x1], 1 }

</bundles_post_ra>
